<compile_context>
chip_gen: v7x
topology: tpu7x:2x2x1
jax: 0.10.0
libtpu: 0.0.40
codegen_flags: <defaults>
</compile_context>

<pallas_src>
import functools

import jax
import jax.numpy as jnp
from jax import lax
from jax.experimental import pallas as pl
from jax.experimental.pallas import tpu as pltpu


def _round_up(x, m):
    return ((x + m - 1) // m) * m


def _apply_nonlin(x, nonlin):
    if nonlin == "sigmoid":
        return jax.nn.sigmoid(x)
    if nonlin == "relu":
        return jnp.maximum(x, 0.0)
    if nonlin == "tanh":
        return jnp.tanh(x)
    if nonlin == "relu6":
        return jnp.clip(x, 0.0, 6.0)
    return x  # 'linear'


def _rnn_seq_kernel(nonlin, compute_dtype, time_block,
                    alpha_ref,                              # SMEM (1,) f32
                    data_ref, h0_ref, o0_ref, i0_ref,       # VMEM inputs
                    w_in_ref, b_h_ref, w_ho_ref, b_o_ref,   # resident weights
                    out_seq_ref, h_seq_ref, i_seq_ref,      # per-block outputs
                    h_scr, o_scr, i_scr):                   # VMEM state carries
    g = pl.program_id(0)

    # Load the recurrent state into scratch once, before the first time block.
    @pl.when(g == 0)
    def _():
        h_scr[...] = h0_ref[...]
        o_scr[...] = o0_ref[...]
        i_scr[...] = i0_ref[...]

    alpha = alpha_ref[0]                    # leak factor (runtime SMEM scalar)
    one_minus_alpha = 1.0 - alpha

    # Hoisted loads of resident operands (weights stay in VMEM across steps).
    w_in = w_in_ref[...]                    # [K, Hp]  (pre-transposed, bf16)
    w_ho = w_ho_ref[...]                    # [Hp, Op] (pre-transposed, bf16)
    b_h = b_h_ref[...]                      # [1, Hp]  f32
    b_o = b_o_ref[...]                      # [1, Op]  f32

    h_prev = h_scr[...]                     # f32 [Bp, Hp]
    o_prev = o_scr[...]                     # f32 [Bp, Op]
    i_prev = i_scr[...]                     # f32 [Bp, Hp]

    # Statically-unrolled inner loop over the time block.
    for tt in range(time_block):
        x = data_ref[tt]                    # [Bp, Dp], already compute_dtype

        # Fused input-side matmul: [x | h_prev | o_prev] @ [Wi2h|Wh2h|Wo2h].T
        # Weight was pre-transposed to [K, Hp] -> canonical MXU contraction.
        x_fused = jnp.concatenate(
            [x, h_prev.astype(compute_dtype), o_prev.astype(compute_dtype)],
            axis=-1)
        pre = lax.dot_general(
            x_fused, w_in,
            dimension_numbers=(((1,), (0,)), ((), ())),
            preferred_element_type=jnp.float32)
        pre = pre + b_h

        # Leaky integration + nonlinearity, all f32 (VPU / EUP).
        i_new = one_minus_alpha * i_prev + alpha * pre
        # TODO(synk): noise_std != 0.0 (Gaussian noise) not wired in (default 0.0).
        h_new = _apply_nonlin(i_new, nonlin)

        # Readout: h @ Wh2o.T + b_h2o (weight pre-transposed to [Hp, Op]).
        out = lax.dot_general(
            h_new.astype(compute_dtype), w_ho,
            dimension_numbers=(((1,), (0,)), ((), ())),
            preferred_element_type=jnp.float32)
        out = out + b_o

        # Per-step outputs (lane-dense: Hp / Op are multiples of 128).
        out_seq_ref[tt] = out
        h_seq_ref[tt] = h_new
        i_seq_ref[tt] = i_new

        # Output feeds back as o_prev for the next step.
        h_prev, o_prev, i_prev = h_new, out, i_new

    # Carry state to the next time block.
    h_scr[...] = h_prev
    o_scr[...] = o_prev
    i_scr[...] = i_prev


def rnn_one_layer_forward_seq(data_seq, h0, o0, i0, params, *,
                              alpha_s=1.0, nonlin="sigmoid",
                              compute_dtype=jnp.bfloat16, time_block=8):
    """Run the full sequence in one pallas_call.

    data_seq: [T, B, D]; h0/i0: [B, H]; o0: [B, O].
    Returns (out_seq [T,B,O], h_seq [T,B,H], i_seq [T,B,H]), all float32.
    """
    f32 = jnp.float32
    T, B, D = data_seq.shape
    H = h0.shape[1]
    O = o0.shape[1]

    TB = max(1, min(time_block, T))
    Tp = _round_up(T, TB)
    Bp = _round_up(B, 8)
    Dp = _round_up(D, 128)
    Hp = _round_up(H, 128)
    Op = _round_up(O, 128)
    K = Dp + Hp + Op

    def pad2(x, r, c):
        return jnp.pad(x.astype(f32), ((0, r - x.shape[0]), (0, c - x.shape[1])))

    # Fused, zero-padded, PRE-TRANSPOSED weights (canonical [K, N] MXU layout).
    # torch layout is [out, in]; transpose once in the wrapper (outside kernel).
    w_in = jnp.concatenate(
        [pad2(params["w_i2h"], Hp, Dp),
         pad2(params["w_h2h"], Hp, Hp),
         pad2(params["w_o2h"], Hp, Op)], axis=1).T.astype(compute_dtype)  # [K, Hp]
    w_ho = pad2(params["w_h2o"], Op, Hp).T.astype(compute_dtype)          # [Hp, Op]
    b_h = jnp.pad(params["b_h2h"].astype(f32), (0, Hp - H)).reshape(1, Hp)
    b_o = jnp.pad(params["b_h2o"].astype(f32), (0, Op - O)).reshape(1, Op)

    # Pre-cast the input stream to the compute dtype (halves input HBM traffic).
    data_p = jnp.pad(data_seq.astype(f32),
                     ((0, Tp - T), (0, Bp - B), (0, Dp - D))).astype(compute_dtype)
    h0_p = pad2(h0, Bp, Hp)
    o0_p = pad2(o0, Bp, Op)
    i0_p = pad2(i0, Bp, Hp)

    alpha = jnp.full((1,), alpha_s, dtype=f32)   # SMEM scalar (no recompiles)

    kernel = functools.partial(_rnn_seq_kernel, nonlin, compute_dtype, TB)

    const2 = lambda g: (0, 0)                    # weights/biases stay resident
    out_shapes = (
        jax.ShapeDtypeStruct((Tp, Bp, Op), f32),  # output sequence
        jax.ShapeDtypeStruct((Tp, Bp, Hp), f32),  # h sequence
        jax.ShapeDtypeStruct((Tp, Bp, Hp), f32),  # i sequence
    )

    out_seq, h_seq, i_seq = pl.pallas_call(
        kernel,
        out_shape=out_shapes,
        grid=(Tp // TB,),
        in_specs=[
            pl.BlockSpec(memory_space=pltpu.MemorySpace.SMEM),   # alpha_s
            pl.BlockSpec((TB, Bp, Dp), lambda g: (g, 0, 0)),     # data block
            pl.BlockSpec((Bp, Hp), const2),                      # h0
            pl.BlockSpec((Bp, Op), const2),                      # o0
            pl.BlockSpec((Bp, Hp), const2),                      # i0
            pl.BlockSpec((K, Hp), const2),                       # fused in-weight
            pl.BlockSpec((1, Hp), const2),                       # b_h2h
            pl.BlockSpec((Hp, Op), const2),                      # w_h2o
            pl.BlockSpec((1, Op), const2),                       # b_h2o
        ],
        out_specs=(
            pl.BlockSpec((TB, Bp, Op), lambda g: (g, 0, 0)),
            pl.BlockSpec((TB, Bp, Hp), lambda g: (g, 0, 0)),
            pl.BlockSpec((TB, Bp, Hp), lambda g: (g, 0, 0)),
        ),
        scratch_shapes=[
            pltpu.VMEM((Bp, Hp), f32),   # h carry
            pltpu.VMEM((Bp, Op), f32),   # o carry (output feedback)
            pltpu.VMEM((Bp, Hp), f32),   # i carry
        ],
        compiler_params=pltpu.CompilerParams(
            dimension_semantics=("arbitrary",),  # recurrence -> sequential grid
        ),
    )(alpha, data_p, h0_p, o0_p, i0_p, w_in, b_h, w_ho, b_o)

    return out_seq[:T, :B, :O], h_seq[:T, :B, :H], i_seq[:T, :B, :H]


def rnn_one_layer_step(data, h_prev, o_prev, i_prev, params, **kw):
    """Single-step forward (exactly the module's forward signature)."""
    out, h, i = rnn_one_layer_forward_seq(data[None], h_prev, o_prev, i_prev,
                                          params, **kw)
    return out[0], h[0], i[0]


def init_params(key, input_size, hidden_size, output_size):
    """Deterministic init mirroring the module's nn.init.uniform_ ranges."""
    k1, k2, k3, k4, k5, k6 = jax.random.split(key, 6)
    return {
        "w_h2h": jax.random.uniform(k1, (hidden_size, hidden_size),
                                    minval=-0.5, maxval=0.5, dtype=jnp.float32),
        "b_h2h": jax.random.uniform(k2, (hidden_size,),
                                    minval=-0.1, maxval=0.1, dtype=jnp.float32),
        "w_i2h": jax.random.uniform(k3, (hidden_size, input_size),
                                    minval=-1.0, maxval=1.0, dtype=jnp.float32),
        "w_o2h": jax.random.uniform(k4, (hidden_size, output_size),
                                    minval=-1.0, maxval=1.0, dtype=jnp.float32),
        "w_h2o": jax.random.uniform(k5, (output_size, hidden_size),
                                    minval=-1.0, maxval=1.0, dtype=jnp.float32),
        "b_h2o": jax.random.uniform(k6, (output_size,),
                                    minval=-0.1, maxval=0.1, dtype=jnp.float32),
    }


def reference_forward_seq(data_seq, h0, o0, i0, params, *,
                          alpha_s=1.0, nonlin="sigmoid",
                          compute_dtype=jnp.float32):
    """Pure-JAX reference (lax.scan) mirroring the kernel's matmul dtype."""
    cd = compute_dtype
    f32 = jnp.float32
    wi = params["w_i2h"].astype(cd)
    wh = params["w_h2h"].astype(cd)
    wo = params["w_o2h"].astype(cd)
    who = params["w_h2o"].astype(cd)
    b_h = params["b_h2h"].astype(f32)
    b_o = params["b_h2o"].astype(f32)

    def step(carry, x_t):
        h_prev, o_prev, i_prev = carry
        pre = (jnp.dot(x_t.astype(cd), wi.T, preferred_element_type=f32)
               + jnp.dot(h_prev.astype(cd), wh.T, preferred_element_type=f32)
               + jnp.dot(o_prev.astype(cd), wo.T, preferred_element_type=f32)
               + b_h)
        i_new = (1.0 - alpha_s) * i_prev + alpha_s * pre
        h_new = _apply_nonlin(i_new, nonlin)
        out = jnp.dot(h_new.astype(cd), who.T, preferred_element_type=f32) + b_o
        return (h_new, out, i_new), (out, h_new, i_new)

    carry0 = (h0.astype(f32), o0.astype(f32), i0.astype(f32))
    _, (out_seq, h_seq, i_seq) = lax.scan(step, carry0, data_seq.astype(f32))
    return out_seq, h_seq, i_seq


if __name__ == "__main__":
    # Small shapes consistent with the module's forward.
    T = 8
    batch = 4
    input_size = 16
    hidden_size = 32
    output_size = 8
    alpha_s = 0.7
    h0_init_val = 0.5

    key = jax.random.PRNGKey(0)
    kp, kd = jax.random.split(key)
    params = init_params(kp, input_size, hidden_size, output_size)

    data_seq = jax.random.normal(kd, (T, batch, input_size), dtype=jnp.float32)
    # init_states equivalent:
    o0 = jnp.zeros((batch, output_size), dtype=jnp.float32)
    h0 = jnp.full((batch, hidden_size), float(h0_init_val), dtype=jnp.float32)
    i0 = jnp.zeros((batch, hidden_size), dtype=jnp.float32)

    out, h, i = rnn_one_layer_forward_seq(
        data_seq, h0, o0, i0, params,
        alpha_s=alpha_s, nonlin="sigmoid", compute_dtype=jnp.bfloat16,
        time_block=8)
    jax.block_until_ready((out, h, i))

    out_r, h_r, i_r = reference_forward_seq(
        data_seq, h0, o0, i0, params,
        alpha_s=alpha_s, nonlin="sigmoid", compute_dtype=jnp.bfloat16)

    assert jnp.allclose(out, out_r, atol=1e-3, rtol=1e-3), \
        float(jnp.max(jnp.abs(out - out_r)))
    assert jnp.allclose(h, h_r, atol=1e-3, rtol=1e-3), \
        float(jnp.max(jnp.abs(h - h_r)))
    assert jnp.allclose(i, i_r, atol=1e-3, rtol=1e-3), \
        float(jnp.max(jnp.abs(i - i_r)))

    print("KERNEL_OK")
</pallas_src>

<mosaic_0001>
module attributes {stable_mosaic.version = 11 : i64} {
  func.func @_rnn_seq_kernel(%arg0: i32, %arg1: memref<1xf32, #tpu.memory_space<smem>>, %arg2: memref<8x8x128xbf16, #tpu.memory_space<vmem>>, %arg3: memref<8x128xf32, #tpu.memory_space<vmem>>, %arg4: memref<8x128xf32, #tpu.memory_space<vmem>>, %arg5: memref<8x128xf32, #tpu.memory_space<vmem>>, %arg6: memref<384x128xbf16, #tpu.memory_space<vmem>>, %arg7: memref<1x128xf32, #tpu.memory_space<vmem>>, %arg8: memref<128x128xbf16, #tpu.memory_space<vmem>>, %arg9: memref<1x128xf32, #tpu.memory_space<vmem>>, %arg10: memref<8x8x128xf32, #tpu.memory_space<vmem>>, %arg11: memref<8x8x128xf32, #tpu.memory_space<vmem>>, %arg12: memref<8x8x128xf32, #tpu.memory_space<vmem>>, %arg13: memref<8x128xf32, #tpu.memory_space<vmem>>, %arg14: memref<8x128xf32, #tpu.memory_space<vmem>>, %arg15: memref<8x128xf32, #tpu.memory_space<vmem>>) attributes {dimension_semantics = [#tpu.dimension_semantics<arbitrary>], iteration_bounds = array<i64: 1>, scalar_prefetch = 0 : i64, scratch_operands = 3 : i64, tpu.core_type = #tpu.core_type<tc>, window_params = [{transform_indices = @transform_0, window_bounds = array<i64: 1>}, {transform_indices = @transform_1, window_bounds = array<i64: 8, 8, 128>}, {pipeline_mode = #tpu.pipeline_mode<synchronous>, transform_indices = @transform_2, window_bounds = array<i64: 8, 128>}, {pipeline_mode = #tpu.pipeline_mode<synchronous>, transform_indices = @transform_3, window_bounds = array<i64: 8, 128>}, {pipeline_mode = #tpu.pipeline_mode<synchronous>, transform_indices = @transform_4, window_bounds = array<i64: 8, 128>}, {pipeline_mode = #tpu.pipeline_mode<synchronous>, transform_indices = @transform_5, window_bounds = array<i64: 384, 128>}, {pipeline_mode = #tpu.pipeline_mode<synchronous>, transform_indices = @transform_6, window_bounds = array<i64: 1, 128>}, {pipeline_mode = #tpu.pipeline_mode<synchronous>, transform_indices = @transform_7, window_bounds = array<i64: 128, 128>}, {pipeline_mode = #tpu.pipeline_mode<synchronous>, transform_indices = @transform_8, window_bounds = array<i64: 1, 128>}, {transform_indices = @transform_9, window_bounds = array<i64: 8, 8, 128>}, {transform_indices = @transform_10, window_bounds = array<i64: 8, 8, 128>}, {transform_indices = @transform_11, window_bounds = array<i64: 8, 8, 128>}]} {
    %c0_i32 = arith.constant 0 : i32
    %0 = arith.cmpi eq, %arg0, %c0_i32 : i32
    %1 = arith.extui %0 : i1 to i32
    %c0_i32_0 = arith.constant 0 : i32
    %2 = arith.cmpi ne, %1, %c0_i32_0 : i32
    scf.if %2 {
      %c0_134 = arith.constant 0 : index
      %c0_135 = arith.constant 0 : index
      %263 = vector.load %arg3[%c0_134, %c0_135] : memref<8x128xf32, #tpu.memory_space<vmem>>, vector<8x128xf32>
      %c0_136 = arith.constant 0 : index
      %c0_137 = arith.constant 0 : index
      %264 = vector.load %arg13[%c0_136, %c0_137] : memref<8x128xf32, #tpu.memory_space<vmem>>, vector<8x128xf32>
      tpu.vector_store %arg13[%c0_136, %c0_137], %263 {strides = array<i32>} : memref<8x128xf32, #tpu.memory_space<vmem>>, vector<8x128xf32>,
      %c0_138 = arith.constant 0 : index
      %c0_139 = arith.constant 0 : index
      %265 = vector.load %arg4[%c0_138, %c0_139] : memref<8x128xf32, #tpu.memory_space<vmem>>, vector<8x128xf32>
      %c0_140 = arith.constant 0 : index
      %c0_141 = arith.constant 0 : index
      %266 = vector.load %arg14[%c0_140, %c0_141] : memref<8x128xf32, #tpu.memory_space<vmem>>, vector<8x128xf32>
      tpu.vector_store %arg14[%c0_140, %c0_141], %265 {strides = array<i32>} : memref<8x128xf32, #tpu.memory_space<vmem>>, vector<8x128xf32>,
      %c0_142 = arith.constant 0 : index
      %c0_143 = arith.constant 0 : index
      %267 = vector.load %arg5[%c0_142, %c0_143] : memref<8x128xf32, #tpu.memory_space<vmem>>, vector<8x128xf32>
      %c0_144 = arith.constant 0 : index
      %c0_145 = arith.constant 0 : index
      %268 = vector.load %arg15[%c0_144, %c0_145] : memref<8x128xf32, #tpu.memory_space<vmem>>, vector<8x128xf32>
      tpu.vector_store %arg15[%c0_144, %c0_145], %267 {strides = array<i32>} : memref<8x128xf32, #tpu.memory_space<vmem>>, vector<8x128xf32>,
    } else {
    }
    %c0 = arith.constant 0 : index
    %3 = memref.load %arg1[%c0] : memref<1xf32, #tpu.memory_space<smem>>
    %cst = arith.constant 1.000000e+00 : f32
    %4 = arith.subf %cst, %3 : f32
    %c0_1 = arith.constant 0 : index
    %c0_2 = arith.constant 0 : index
    %5 = vector.load %arg6[%c0_1, %c0_2] : memref<384x128xbf16, #tpu.memory_space<vmem>>, vector<384x128xbf16>
    %c0_3 = arith.constant 0 : index
    %c0_4 = arith.constant 0 : index
    %6 = vector.load %arg8[%c0_3, %c0_4] : memref<128x128xbf16, #tpu.memory_space<vmem>>, vector<128x128xbf16>
    %c0_5 = arith.constant 0 : index
    %c0_6 = arith.constant 0 : index
    %7 = vector.load %arg7[%c0_5, %c0_6] : memref<1x128xf32, #tpu.memory_space<vmem>>, vector<1x128xf32>
    %c0_7 = arith.constant 0 : index
    %c0_8 = arith.constant 0 : index
    %8 = vector.load %arg9[%c0_7, %c0_8] : memref<1x128xf32, #tpu.memory_space<vmem>>, vector<1x128xf32>
    %c0_9 = arith.constant 0 : index
    %c0_10 = arith.constant 0 : index
    %9 = vector.load %arg13[%c0_9, %c0_10] : memref<8x128xf32, #tpu.memory_space<vmem>>, vector<8x128xf32>
    %c0_11 = arith.constant 0 : index
    %c0_12 = arith.constant 0 : index
    %10 = vector.load %arg14[%c0_11, %c0_12] : memref<8x128xf32, #tpu.memory_space<vmem>>, vector<8x128xf32>
    %c0_13 = arith.constant 0 : index
    %c0_14 = arith.constant 0 : index
    %11 = vector.load %arg15[%c0_13, %c0_14] : memref<8x128xf32, #tpu.memory_space<vmem>>, vector<8x128xf32>
    %c0_15 = arith.constant 0 : index
    %c0_16 = arith.constant 0 : index
    %c0_17 = arith.constant 0 : index
    %12 = vector.load %arg2[%c0_15, %c0_16, %c0_17] : memref<8x8x128xbf16, #tpu.memory_space<vmem>>, vector<1x8x128xbf16>
    %13 = vector.shape_cast %12 : vector<1x8x128xbf16> to vector<8x128xbf16>
    %14 = arith.truncf %9 : vector<8x128xf32> to vector<8x128xbf16>
    %15 = arith.truncf %10 : vector<8x128xf32> to vector<8x128xbf16>
    %16 = tpu.concatenate %13, %14, %15 in 1 : vector<8x128xbf16>, vector<8x128xbf16>, vector<8x128xbf16> -> vector<8x384xbf16>
    %cst_18 = arith.constant dense<0.000000e+00> : vector<8x128xf32>
    %17 = tpu.matmul %16, %5, %cst_18 {dimension_numbers = #tpu.dot_dimension_numbers<[1], [0], [0], [1], [0, 0, 1, 1], [], []>} : vector<8x384xbf16>, vector<384x128xbf16>, vector<8x128xf32> -> vector<8x128xf32>
    %18 = vector.broadcast %7 : vector<1x128xf32> to vector<8x128xf32>
    %19 = arith.addf %17, %18 : vector<8x128xf32>
    %20 = vector.broadcast %4 : f32 to vector<8x128xf32>
    %21 = arith.mulf %20, %11 : vector<8x128xf32>
    %22 = vector.broadcast %3 : f32 to vector<8x128xf32>
    %23 = arith.mulf %22, %19 : vector<8x128xf32>
    %24 = arith.addf %21, %23 : vector<8x128xf32>
    %25 = arith.negf %24 : vector<8x128xf32>
    %26 = math.exp %25 : vector<8x128xf32>
    %cst_19 = arith.constant 1.000000e+00 : f32
    %27 = vector.broadcast %cst_19 : f32 to vector<8x128xf32>
    %28 = arith.addf %27, %26 : vector<8x128xf32>
    %29 = arith.divf %27, %28 : vector<8x128xf32>
    %30 = arith.truncf %29 : vector<8x128xf32> to vector<8x128xbf16>
    %cst_20 = arith.constant dense<0.000000e+00> : vector<8x128xf32>
    %31 = tpu.matmul %30, %6, %cst_20 {dimension_numbers = #tpu.dot_dimension_numbers<[1], [0], [0], [1], [0, 0, 1, 1], [], []>} : vector<8x128xbf16>, vector<128x128xbf16>, vector<8x128xf32> -> vector<8x128xf32>
    %32 = vector.broadcast %8 : vector<1x128xf32> to vector<8x128xf32>
    %33 = arith.addf %31, %32 : vector<8x128xf32>
    %c0_21 = arith.constant 0 : index
    %c0_22 = arith.constant 0 : index
    %c0_23 = arith.constant 0 : index
    %34 = vector.load %arg10[%c0_21, %c0_22, %c0_23] : memref<8x8x128xf32, #tpu.memory_space<vmem>>, vector<1x8x128xf32>
    %35 = vector.shape_cast %34 : vector<1x8x128xf32> to vector<8x128xf32>
    %36 = vector.shape_cast %33 : vector<8x128xf32> to vector<1x8x128xf32>
    tpu.vector_store %arg10[%c0_21, %c0_22, %c0_23], %36 {strides = array<i32>} : memref<8x8x128xf32, #tpu.memory_space<vmem>>, vector<1x8x128xf32>,
    %c0_24 = arith.constant 0 : index
    %c0_25 = arith.constant 0 : index
    %c0_26 = arith.constant 0 : index
    %37 = vector.load %arg11[%c0_24, %c0_25, %c0_26] : memref<8x8x128xf32, #tpu.memory_space<vmem>>, vector<1x8x128xf32>
    %38 = vector.shape_cast %37 : vector<1x8x128xf32> to vector<8x128xf32>
    %39 = vector.shape_cast %29 : vector<8x128xf32> to vector<1x8x128xf32>
    tpu.vector_store %arg11[%c0_24, %c0_25, %c0_26], %39 {strides = array<i32>} : memref<8x8x128xf32, #tpu.memory_space<vmem>>, vector<1x8x128xf32>,
    %c0_27 = arith.constant 0 : index
    %c0_28 = arith.constant 0 : index
    %c0_29 = arith.constant 0 : index
    %40 = vector.load %arg12[%c0_27, %c0_28, %c0_29] : memref<8x8x128xf32, #tpu.memory_space<vmem>>, vector<1x8x128xf32>
    %41 = vector.shape_cast %40 : vector<1x8x128xf32> to vector<8x128xf32>
    %42 = vector.shape_cast %24 : vector<8x128xf32> to vector<1x8x128xf32>
    tpu.vector_store %arg12[%c0_27, %c0_28, %c0_29], %42 {strides = array<i32>} : memref<8x8x128xf32, #tpu.memory_space<vmem>>, vector<1x8x128xf32>,
    %c1 = arith.constant 1 : index
    %c0_30 = arith.constant 0 : index
    %c0_31 = arith.constant 0 : index
    %43 = vector.load %arg2[%c1, %c0_30, %c0_31] : memref<8x8x128xbf16, #tpu.memory_space<vmem>>, vector<1x8x128xbf16>
    %44 = vector.shape_cast %43 : vector<1x8x128xbf16> to vector<8x128xbf16>
    %45 = arith.truncf %29 : vector<8x128xf32> to vector<8x128xbf16>
    %46 = arith.truncf %33 : vector<8x128xf32> to vector<8x128xbf16>
    %47 = tpu.concatenate %44, %45, %46 in 1 : vector<8x128xbf16>, vector<8x128xbf16>, vector<8x128xbf16> -> vector<8x384xbf16>
    %cst_32 = arith.constant dense<0.000000e+00> : vector<8x128xf32>
    %48 = tpu.matmul %47, %5, %cst_32 {dimension_numbers = #tpu.dot_dimension_numbers<[1], [0], [0], [1], [0, 0, 1, 1], [], []>} : vector<8x384xbf16>, vector<384x128xbf16>, vector<8x128xf32> -> vector<8x128xf32>
    %49 = vector.broadcast %7 : vector<1x128xf32> to vector<8x128xf32>
    %50 = arith.addf %48, %49 : vector<8x128xf32>
    %51 = vector.broadcast %4 : f32 to vector<8x128xf32>
    %52 = arith.mulf %51, %24 : vector<8x128xf32>
    %53 = vector.broadcast %3 : f32 to vector<8x128xf32>
    %54 = arith.mulf %53, %50 : vector<8x128xf32>
    %55 = arith.addf %52, %54 : vector<8x128xf32>
    %56 = arith.negf %55 : vector<8x128xf32>
    %57 = math.exp %56 : vector<8x128xf32>
    %cst_33 = arith.constant 1.000000e+00 : f32
    %58 = vector.broadcast %cst_33 : f32 to vector<8x128xf32>
    %59 = arith.addf %58, %57 : vector<8x128xf32>
    %60 = arith.divf %58, %59 : vector<8x128xf32>
    %61 = arith.truncf %60 : vector<8x128xf32> to vector<8x128xbf16>
    %cst_34 = arith.constant dense<0.000000e+00> : vector<8x128xf32>
    %62 = tpu.matmul %61, %6, %cst_34 {dimension_numbers = #tpu.dot_dimension_numbers<[1], [0], [0], [1], [0, 0, 1, 1], [], []>} : vector<8x128xbf16>, vector<128x128xbf16>, vector<8x128xf32> -> vector<8x128xf32>
    %63 = vector.broadcast %8 : vector<1x128xf32> to vector<8x128xf32>
    %64 = arith.addf %62, %63 : vector<8x128xf32>
    %c1_35 = arith.constant 1 : index
    %c0_36 = arith.constant 0 : index
    %c0_37 = arith.constant 0 : index
    %65 = vector.load %arg10[%c1_35, %c0_36, %c0_37] : memref<8x8x128xf32, #tpu.memory_space<vmem>>, vector<1x8x128xf32>
    %66 = vector.shape_cast %65 : vector<1x8x128xf32> to vector<8x128xf32>
    %67 = vector.shape_cast %64 : vector<8x128xf32> to vector<1x8x128xf32>
    tpu.vector_store %arg10[%c1_35, %c0_36, %c0_37], %67 {strides = array<i32>} : memref<8x8x128xf32, #tpu.memory_space<vmem>>, vector<1x8x128xf32>,
    %c1_38 = arith.constant 1 : index
    %c0_39 = arith.constant 0 : index
    %c0_40 = arith.constant 0 : index
    %68 = vector.load %arg11[%c1_38, %c0_39, %c0_40] : memref<8x8x128xf32, #tpu.memory_space<vmem>>, vector<1x8x128xf32>
    %69 = vector.shape_cast %68 : vector<1x8x128xf32> to vector<8x128xf32>
    %70 = vector.shape_cast %60 : vector<8x128xf32> to vector<1x8x128xf32>
    tpu.vector_store %arg11[%c1_38, %c0_39, %c0_40], %70 {strides = array<i32>} : memref<8x8x128xf32, #tpu.memory_space<vmem>>, vector<1x8x128xf32>,
    %c1_41 = arith.constant 1 : index
    %c0_42 = arith.constant 0 : index
    %c0_43 = arith.constant 0 : index
    %71 = vector.load %arg12[%c1_41, %c0_42, %c0_43] : memref<8x8x128xf32, #tpu.memory_space<vmem>>, vector<1x8x128xf32>
    %72 = vector.shape_cast %71 : vector<1x8x128xf32> to vector<8x128xf32>
    %73 = vector.shape_cast %55 : vector<8x128xf32> to vector<1x8x128xf32>
    tpu.vector_store %arg12[%c1_41, %c0_42, %c0_43], %73 {strides = array<i32>} : memref<8x8x128xf32, #tpu.memory_space<vmem>>, vector<1x8x128xf32>,
    %c2 = arith.constant 2 : index
    %c0_44 = arith.constant 0 : index
    %c0_45 = arith.constant 0 : index
    %74 = vector.load %arg2[%c2, %c0_44, %c0_45] : memref<8x8x128xbf16, #tpu.memory_space<vmem>>, vector<1x8x128xbf16>
    %75 = vector.shape_cast %74 : vector<1x8x128xbf16> to vector<8x128xbf16>
    %76 = arith.truncf %60 : vector<8x128xf32> to vector<8x128xbf16>
    %77 = arith.truncf %64 : vector<8x128xf32> to vector<8x128xbf16>
    %78 = tpu.concatenate %75, %76, %77 in 1 : vector<8x128xbf16>, vector<8x128xbf16>, vector<8x128xbf16> -> vector<8x384xbf16>
    %cst_46 = arith.constant dense<0.000000e+00> : vector<8x128xf32>
    %79 = tpu.matmul %78, %5, %cst_46 {dimension_numbers = #tpu.dot_dimension_numbers<[1], [0], [0], [1], [0, 0, 1, 1], [], []>} : vector<8x384xbf16>, vector<384x128xbf16>, vector<8x128xf32> -> vector<8x128xf32>
    %80 = vector.broadcast %7 : vector<1x128xf32> to vector<8x128xf32>
    %81 = arith.addf %79, %80 : vector<8x128xf32>
    %82 = vector.broadcast %4 : f32 to vector<8x128xf32>
    %83 = arith.mulf %82, %55 : vector<8x128xf32>
    %84 = vector.broadcast %3 : f32 to vector<8x128xf32>
    %85 = arith.mulf %84, %81 : vector<8x128xf32>
    %86 = arith.addf %83, %85 : vector<8x128xf32>
    %87 = arith.negf %86 : vector<8x128xf32>
    %88 = math.exp %87 : vector<8x128xf32>
    %cst_47 = arith.constant 1.000000e+00 : f32
    %89 = vector.broadcast %cst_47 : f32 to vector<8x128xf32>
    %90 = arith.addf %89, %88 : vector<8x128xf32>
    %91 = arith.divf %89, %90 : vector<8x128xf32>
    %92 = arith.truncf %91 : vector<8x128xf32> to vector<8x128xbf16>
    %cst_48 = arith.constant dense<0.000000e+00> : vector<8x128xf32>
    %93 = tpu.matmul %92, %6, %cst_48 {dimension_numbers = #tpu.dot_dimension_numbers<[1], [0], [0], [1], [0, 0, 1, 1], [], []>} : vector<8x128xbf16>, vector<128x128xbf16>, vector<8x128xf32> -> vector<8x128xf32>
    %94 = vector.broadcast %8 : vector<1x128xf32> to vector<8x128xf32>
    %95 = arith.addf %93, %94 : vector<8x128xf32>
    %c2_49 = arith.constant 2 : index
    %c0_50 = arith.constant 0 : index
    %c0_51 = arith.constant 0 : index
    %96 = vector.load %arg10[%c2_49, %c0_50, %c0_51] : memref<8x8x128xf32, #tpu.memory_space<vmem>>, vector<1x8x128xf32>
    %97 = vector.shape_cast %96 : vector<1x8x128xf32> to vector<8x128xf32>
    %98 = vector.shape_cast %95 : vector<8x128xf32> to vector<1x8x128xf32>
    tpu.vector_store %arg10[%c2_49, %c0_50, %c0_51], %98 {strides = array<i32>} : memref<8x8x128xf32, #tpu.memory_space<vmem>>, vector<1x8x128xf32>,
    %c2_52 = arith.constant 2 : index
    %c0_53 = arith.constant 0 : index
    %c0_54 = arith.constant 0 : index
    %99 = vector.load %arg11[%c2_52, %c0_53, %c0_54] : memref<8x8x128xf32, #tpu.memory_space<vmem>>, vector<1x8x128xf32>
    %100 = vector.shape_cast %99 : vector<1x8x128xf32> to vector<8x128xf32>
    %101 = vector.shape_cast %91 : vector<8x128xf32> to vector<1x8x128xf32>
    tpu.vector_store %arg11[%c2_52, %c0_53, %c0_54], %101 {strides = array<i32>} : memref<8x8x128xf32, #tpu.memory_space<vmem>>, vector<1x8x128xf32>,
    %c2_55 = arith.constant 2 : index
    %c0_56 = arith.constant 0 : index
    %c0_57 = arith.constant 0 : index
    %102 = vector.load %arg12[%c2_55, %c0_56, %c0_57] : memref<8x8x128xf32, #tpu.memory_space<vmem>>, vector<1x8x128xf32>
    %103 = vector.shape_cast %102 : vector<1x8x128xf32> to vector<8x128xf32>
    %104 = vector.shape_cast %86 : vector<8x128xf32> to vector<1x8x128xf32>
    tpu.vector_store %arg12[%c2_55, %c0_56, %c0_57], %104 {strides = array<i32>} : memref<8x8x128xf32, #tpu.memory_space<vmem>>, vector<1x8x128xf32>,
    %c3 = arith.constant 3 : index
    %c0_58 = arith.constant 0 : index
    %c0_59 = arith.constant 0 : index
    %105 = vector.load %arg2[%c3, %c0_58, %c0_59] : memref<8x8x128xbf16, #tpu.memory_space<vmem>>, vector<1x8x128xbf16>
    %106 = vector.shape_cast %105 : vector<1x8x128xbf16> to vector<8x128xbf16>
    %107 = arith.truncf %91 : vector<8x128xf32> to vector<8x128xbf16>
    %108 = arith.truncf %95 : vector<8x128xf32> to vector<8x128xbf16>
    %109 = tpu.concatenate %106, %107, %108 in 1 : vector<8x128xbf16>, vector<8x128xbf16>, vector<8x128xbf16> -> vector<8x384xbf16>
    %cst_60 = arith.constant dense<0.000000e+00> : vector<8x128xf32>
    %110 = tpu.matmul %109, %5, %cst_60 {dimension_numbers = #tpu.dot_dimension_numbers<[1], [0], [0], [1], [0, 0, 1, 1], [], []>} : vector<8x384xbf16>, vector<384x128xbf16>, vector<8x128xf32> -> vector<8x128xf32>
    %111 = vector.broadcast %7 : vector<1x128xf32> to vector<8x128xf32>
    %112 = arith.addf %110, %111 : vector<8x128xf32>
    %113 = vector.broadcast %4 : f32 to vector<8x128xf32>
    %114 = arith.mulf %113, %86 : vector<8x128xf32>
    %115 = vector.broadcast %3 : f32 to vector<8x128xf32>
    %116 = arith.mulf %115, %112 : vector<8x128xf32>
    %117 = arith.addf %114, %116 : vector<8x128xf32>
    %118 = arith.negf %117 : vector<8x128xf32>
    %119 = math.exp %118 : vector<8x128xf32>
    %cst_61 = arith.constant 1.000000e+00 : f32
    %120 = vector.broadcast %cst_61 : f32 to vector<8x128xf32>
    %121 = arith.addf %120, %119 : vector<8x128xf32>
    %122 = arith.divf %120, %121 : vector<8x128xf32>
    %123 = arith.truncf %122 : vector<8x128xf32> to vector<8x128xbf16>
    %cst_62 = arith.constant dense<0.000000e+00> : vector<8x128xf32>
    %124 = tpu.matmul %123, %6, %cst_62 {dimension_numbers = #tpu.dot_dimension_numbers<[1], [0], [0], [1], [0, 0, 1, 1], [], []>} : vector<8x128xbf16>, vector<128x128xbf16>, vector<8x128xf32> -> vector<8x128xf32>
    %125 = vector.broadcast %8 : vector<1x128xf32> to vector<8x128xf32>
    %126 = arith.addf %124, %125 : vector<8x128xf32>
    %c3_63 = arith.constant 3 : index
    %c0_64 = arith.constant 0 : index
    %c0_65 = arith.constant 0 : index
    %127 = vector.load %arg10[%c3_63, %c0_64, %c0_65] : memref<8x8x128xf32, #tpu.memory_space<vmem>>, vector<1x8x128xf32>
    %128 = vector.shape_cast %127 : vector<1x8x128xf32> to vector<8x128xf32>
    %129 = vector.shape_cast %126 : vector<8x128xf32> to vector<1x8x128xf32>
    tpu.vector_store %arg10[%c3_63, %c0_64, %c0_65], %129 {strides = array<i32>} : memref<8x8x128xf32, #tpu.memory_space<vmem>>, vector<1x8x128xf32>,
    %c3_66 = arith.constant 3 : index
    %c0_67 = arith.constant 0 : index
    %c0_68 = arith.constant 0 : index
    %130 = vector.load %arg11[%c3_66, %c0_67, %c0_68] : memref<8x8x128xf32, #tpu.memory_space<vmem>>, vector<1x8x128xf32>
    %131 = vector.shape_cast %130 : vector<1x8x128xf32> to vector<8x128xf32>
    %132 = vector.shape_cast %122 : vector<8x128xf32> to vector<1x8x128xf32>
    tpu.vector_store %arg11[%c3_66, %c0_67, %c0_68], %132 {strides = array<i32>} : memref<8x8x128xf32, #tpu.memory_space<vmem>>, vector<1x8x128xf32>,
    %c3_69 = arith.constant 3 : index
    %c0_70 = arith.constant 0 : index
    %c0_71 = arith.constant 0 : index
    %133 = vector.load %arg12[%c3_69, %c0_70, %c0_71] : memref<8x8x128xf32, #tpu.memory_space<vmem>>, vector<1x8x128xf32>
    %134 = vector.shape_cast %133 : vector<1x8x128xf32> to vector<8x128xf32>
    %135 = vector.shape_cast %117 : vector<8x128xf32> to vector<1x8x128xf32>
    tpu.vector_store %arg12[%c3_69, %c0_70, %c0_71], %135 {strides = array<i32>} : memref<8x8x128xf32, #tpu.memory_space<vmem>>, vector<1x8x128xf32>,
    %c4 = arith.constant 4 : index
    %c0_72 = arith.constant 0 : index
    %c0_73 = arith.constant 0 : index
    %136 = vector.load %arg2[%c4, %c0_72, %c0_73] : memref<8x8x128xbf16, #tpu.memory_space<vmem>>, vector<1x8x128xbf16>
    %137 = vector.shape_cast %136 : vector<1x8x128xbf16> to vector<8x128xbf16>
    %138 = arith.truncf %122 : vector<8x128xf32> to vector<8x128xbf16>
    %139 = arith.truncf %126 : vector<8x128xf32> to vector<8x128xbf16>
    %140 = tpu.concatenate %137, %138, %139 in 1 : vector<8x128xbf16>, vector<8x128xbf16>, vector<8x128xbf16> -> vector<8x384xbf16>
    %cst_74 = arith.constant dense<0.000000e+00> : vector<8x128xf32>
    %141 = tpu.matmul %140, %5, %cst_74 {dimension_numbers = #tpu.dot_dimension_numbers<[1], [0], [0], [1], [0, 0, 1, 1], [], []>} : vector<8x384xbf16>, vector<384x128xbf16>, vector<8x128xf32> -> vector<8x128xf32>
    %142 = vector.broadcast %7 : vector<1x128xf32> to vector<8x128xf32>
    %143 = arith.addf %141, %142 : vector<8x128xf32>
    %144 = vector.broadcast %4 : f32 to vector<8x128xf32>
    %145 = arith.mulf %144, %117 : vector<8x128xf32>
    %146 = vector.broadcast %3 : f32 to vector<8x128xf32>
    %147 = arith.mulf %146, %143 : vector<8x128xf32>
    %148 = arith.addf %145, %147 : vector<8x128xf32>
    %149 = arith.negf %148 : vector<8x128xf32>
    %150 = math.exp %149 : vector<8x128xf32>
    %cst_75 = arith.constant 1.000000e+00 : f32
    %151 = vector.broadcast %cst_75 : f32 to vector<8x128xf32>
    %152 = arith.addf %151, %150 : vector<8x128xf32>
    %153 = arith.divf %151, %152 : vector<8x128xf32>
    %154 = arith.truncf %153 : vector<8x128xf32> to vector<8x128xbf16>
    %cst_76 = arith.constant dense<0.000000e+00> : vector<8x128xf32>
    %155 = tpu.matmul %154, %6, %cst_76 {dimension_numbers = #tpu.dot_dimension_numbers<[1], [0], [0], [1], [0, 0, 1, 1], [], []>} : vector<8x128xbf16>, vector<128x128xbf16>, vector<8x128xf32> -> vector<8x128xf32>
    %156 = vector.broadcast %8 : vector<1x128xf32> to vector<8x128xf32>
    %157 = arith.addf %155, %156 : vector<8x128xf32>
    %c4_77 = arith.constant 4 : index
    %c0_78 = arith.constant 0 : index
    %c0_79 = arith.constant 0 : index
    %158 = vector.load %arg10[%c4_77, %c0_78, %c0_79] : memref<8x8x128xf32, #tpu.memory_space<vmem>>, vector<1x8x128xf32>
    %159 = vector.shape_cast %158 : vector<1x8x128xf32> to vector<8x128xf32>
    %160 = vector.shape_cast %157 : vector<8x128xf32> to vector<1x8x128xf32>
    tpu.vector_store %arg10[%c4_77, %c0_78, %c0_79], %160 {strides = array<i32>} : memref<8x8x128xf32, #tpu.memory_space<vmem>>, vector<1x8x128xf32>,
    %c4_80 = arith.constant 4 : index
    %c0_81 = arith.constant 0 : index
    %c0_82 = arith.constant 0 : index
    %161 = vector.load %arg11[%c4_80, %c0_81, %c0_82] : memref<8x8x128xf32, #tpu.memory_space<vmem>>, vector<1x8x128xf32>
    %162 = vector.shape_cast %161 : vector<1x8x128xf32> to vector<8x128xf32>
    %163 = vector.shape_cast %153 : vector<8x128xf32> to vector<1x8x128xf32>
    tpu.vector_store %arg11[%c4_80, %c0_81, %c0_82], %163 {strides = array<i32>} : memref<8x8x128xf32, #tpu.memory_space<vmem>>, vector<1x8x128xf32>,
    %c4_83 = arith.constant 4 : index
    %c0_84 = arith.constant 0 : index
    %c0_85 = arith.constant 0 : index
    %164 = vector.load %arg12[%c4_83, %c0_84, %c0_85] : memref<8x8x128xf32, #tpu.memory_space<vmem>>, vector<1x8x128xf32>
    %165 = vector.shape_cast %164 : vector<1x8x128xf32> to vector<8x128xf32>
    %166 = vector.shape_cast %148 : vector<8x128xf32> to vector<1x8x128xf32>
    tpu.vector_store %arg12[%c4_83, %c0_84, %c0_85], %166 {strides = array<i32>} : memref<8x8x128xf32, #tpu.memory_space<vmem>>, vector<1x8x128xf32>,
    %c5 = arith.constant 5 : index
    %c0_86 = arith.constant 0 : index
    %c0_87 = arith.constant 0 : index
    %167 = vector.load %arg2[%c5, %c0_86, %c0_87] : memref<8x8x128xbf16, #tpu.memory_space<vmem>>, vector<1x8x128xbf16>
    %168 = vector.shape_cast %167 : vector<1x8x128xbf16> to vector<8x128xbf16>
    %169 = arith.truncf %153 : vector<8x128xf32> to vector<8x128xbf16>
    %170 = arith.truncf %157 : vector<8x128xf32> to vector<8x128xbf16>
    %171 = tpu.concatenate %168, %169, %170 in 1 : vector<8x128xbf16>, vector<8x128xbf16>, vector<8x128xbf16> -> vector<8x384xbf16>
    %cst_88 = arith.constant dense<0.000000e+00> : vector<8x128xf32>
    %172 = tpu.matmul %171, %5, %cst_88 {dimension_numbers = #tpu.dot_dimension_numbers<[1], [0], [0], [1], [0, 0, 1, 1], [], []>} : vector<8x384xbf16>, vector<384x128xbf16>, vector<8x128xf32> -> vector<8x128xf32>
    %173 = vector.broadcast %7 : vector<1x128xf32> to vector<8x128xf32>
    %174 = arith.addf %172, %173 : vector<8x128xf32>
    %175 = vector.broadcast %4 : f32 to vector<8x128xf32>
    %176 = arith.mulf %175, %148 : vector<8x128xf32>
    %177 = vector.broadcast %3 : f32 to vector<8x128xf32>
    %178 = arith.mulf %177, %174 : vector<8x128xf32>
    %179 = arith.addf %176, %178 : vector<8x128xf32>
    %180 = arith.negf %179 : vector<8x128xf32>
    %181 = math.exp %180 : vector<8x128xf32>
    %cst_89 = arith.constant 1.000000e+00 : f32
    %182 = vector.broadcast %cst_89 : f32 to vector<8x128xf32>
    %183 = arith.addf %182, %181 : vector<8x128xf32>
    %184 = arith.divf %182, %183 : vector<8x128xf32>
    %185 = arith.truncf %184 : vector<8x128xf32> to vector<8x128xbf16>
    %cst_90 = arith.constant dense<0.000000e+00> : vector<8x128xf32>
    %186 = tpu.matmul %185, %6, %cst_90 {dimension_numbers = #tpu.dot_dimension_numbers<[1], [0], [0], [1], [0, 0, 1, 1], [], []>} : vector<8x128xbf16>, vector<128x128xbf16>, vector<8x128xf32> -> vector<8x128xf32>
    %187 = vector.broadcast %8 : vector<1x128xf32> to vector<8x128xf32>
    %188 = arith.addf %186, %187 : vector<8x128xf32>
    %c5_91 = arith.constant 5 : index
    %c0_92 = arith.constant 0 : index
    %c0_93 = arith.constant 0 : index
    %189 = vector.load %arg10[%c5_91, %c0_92, %c0_93] : memref<8x8x128xf32, #tpu.memory_space<vmem>>, vector<1x8x128xf32>
    %190 = vector.shape_cast %189 : vector<1x8x128xf32> to vector<8x128xf32>
    %191 = vector.shape_cast %188 : vector<8x128xf32> to vector<1x8x128xf32>
    tpu.vector_store %arg10[%c5_91, %c0_92, %c0_93], %191 {strides = array<i32>} : memref<8x8x128xf32, #tpu.memory_space<vmem>>, vector<1x8x128xf32>,
    %c5_94 = arith.constant 5 : index
    %c0_95 = arith.constant 0 : index
    %c0_96 = arith.constant 0 : index
    %192 = vector.load %arg11[%c5_94, %c0_95, %c0_96] : memref<8x8x128xf32, #tpu.memory_space<vmem>>, vector<1x8x128xf32>
    %193 = vector.shape_cast %192 : vector<1x8x128xf32> to vector<8x128xf32>
    %194 = vector.shape_cast %184 : vector<8x128xf32> to vector<1x8x128xf32>
    tpu.vector_store %arg11[%c5_94, %c0_95, %c0_96], %194 {strides = array<i32>} : memref<8x8x128xf32, #tpu.memory_space<vmem>>, vector<1x8x128xf32>,
    %c5_97 = arith.constant 5 : index
    %c0_98 = arith.constant 0 : index
    %c0_99 = arith.constant 0 : index
    %195 = vector.load %arg12[%c5_97, %c0_98, %c0_99] : memref<8x8x128xf32, #tpu.memory_space<vmem>>, vector<1x8x128xf32>
    %196 = vector.shape_cast %195 : vector<1x8x128xf32> to vector<8x128xf32>
    %197 = vector.shape_cast %179 : vector<8x128xf32> to vector<1x8x128xf32>
    tpu.vector_store %arg12[%c5_97, %c0_98, %c0_99], %197 {strides = array<i32>} : memref<8x8x128xf32, #tpu.memory_space<vmem>>, vector<1x8x128xf32>,
    %c6 = arith.constant 6 : index
    %c0_100 = arith.constant 0 : index
    %c0_101 = arith.constant 0 : index
    %198 = vector.load %arg2[%c6, %c0_100, %c0_101] : memref<8x8x128xbf16, #tpu.memory_space<vmem>>, vector<1x8x128xbf16>
    %199 = vector.shape_cast %198 : vector<1x8x128xbf16> to vector<8x128xbf16>
    %200 = arith.truncf %184 : vector<8x128xf32> to vector<8x128xbf16>
    %201 = arith.truncf %188 : vector<8x128xf32> to vector<8x128xbf16>
    %202 = tpu.concatenate %199, %200, %201 in 1 : vector<8x128xbf16>, vector<8x128xbf16>, vector<8x128xbf16> -> vector<8x384xbf16>
    %cst_102 = arith.constant dense<0.000000e+00> : vector<8x128xf32>
    %203 = tpu.matmul %202, %5, %cst_102 {dimension_numbers = #tpu.dot_dimension_numbers<[1], [0], [0], [1], [0, 0, 1, 1], [], []>} : vector<8x384xbf16>, vector<384x128xbf16>, vector<8x128xf32> -> vector<8x128xf32>
    %204 = vector.broadcast %7 : vector<1x128xf32> to vector<8x128xf32>
    %205 = arith.addf %203, %204 : vector<8x128xf32>
    %206 = vector.broadcast %4 : f32 to vector<8x128xf32>
    %207 = arith.mulf %206, %179 : vector<8x128xf32>
    %208 = vector.broadcast %3 : f32 to vector<8x128xf32>
    %209 = arith.mulf %208, %205 : vector<8x128xf32>
    %210 = arith.addf %207, %209 : vector<8x128xf32>
    %211 = arith.negf %210 : vector<8x128xf32>
    %212 = math.exp %211 : vector<8x128xf32>
    %cst_103 = arith.constant 1.000000e+00 : f32
    %213 = vector.broadcast %cst_103 : f32 to vector<8x128xf32>
    %214 = arith.addf %213, %212 : vector<8x128xf32>
    %215 = arith.divf %213, %214 : vector<8x128xf32>
    %216 = arith.truncf %215 : vector<8x128xf32> to vector<8x128xbf16>
    %cst_104 = arith.constant dense<0.000000e+00> : vector<8x128xf32>
    %217 = tpu.matmul %216, %6, %cst_104 {dimension_numbers = #tpu.dot_dimension_numbers<[1], [0], [0], [1], [0, 0, 1, 1], [], []>} : vector<8x128xbf16>, vector<128x128xbf16>, vector<8x128xf32> -> vector<8x128xf32>
    %218 = vector.broadcast %8 : vector<1x128xf32> to vector<8x128xf32>
    %219 = arith.addf %217, %218 : vector<8x128xf32>
    %c6_105 = arith.constant 6 : index
    %c0_106 = arith.constant 0 : index
    %c0_107 = arith.constant 0 : index
    %220 = vector.load %arg10[%c6_105, %c0_106, %c0_107] : memref<8x8x128xf32, #tpu.memory_space<vmem>>, vector<1x8x128xf32>
    %221 = vector.shape_cast %220 : vector<1x8x128xf32> to vector<8x128xf32>
    %222 = vector.shape_cast %219 : vector<8x128xf32> to vector<1x8x128xf32>
    tpu.vector_store %arg10[%c6_105, %c0_106, %c0_107], %222 {strides = array<i32>} : memref<8x8x128xf32, #tpu.memory_space<vmem>>, vector<1x8x128xf32>,
    %c6_108 = arith.constant 6 : index
    %c0_109 = arith.constant 0 : index
    %c0_110 = arith.constant 0 : index
    %223 = vector.load %arg11[%c6_108, %c0_109, %c0_110] : memref<8x8x128xf32, #tpu.memory_space<vmem>>, vector<1x8x128xf32>
    %224 = vector.shape_cast %223 : vector<1x8x128xf32> to vector<8x128xf32>
    %225 = vector.shape_cast %215 : vector<8x128xf32> to vector<1x8x128xf32>
    tpu.vector_store %arg11[%c6_108, %c0_109, %c0_110], %225 {strides = array<i32>} : memref<8x8x128xf32, #tpu.memory_space<vmem>>, vector<1x8x128xf32>,
    %c6_111 = arith.constant 6 : index
    %c0_112 = arith.constant 0 : index
    %c0_113 = arith.constant 0 : index
    %226 = vector.load %arg12[%c6_111, %c0_112, %c0_113] : memref<8x8x128xf32, #tpu.memory_space<vmem>>, vector<1x8x128xf32>
    %227 = vector.shape_cast %226 : vector<1x8x128xf32> to vector<8x128xf32>
    %228 = vector.shape_cast %210 : vector<8x128xf32> to vector<1x8x128xf32>
    tpu.vector_store %arg12[%c6_111, %c0_112, %c0_113], %228 {strides = array<i32>} : memref<8x8x128xf32, #tpu.memory_space<vmem>>, vector<1x8x128xf32>,
    %c7 = arith.constant 7 : index
    %c0_114 = arith.constant 0 : index
    %c0_115 = arith.constant 0 : index
    %229 = vector.load %arg2[%c7, %c0_114, %c0_115] : memref<8x8x128xbf16, #tpu.memory_space<vmem>>, vector<1x8x128xbf16>
    %230 = vector.shape_cast %229 : vector<1x8x128xbf16> to vector<8x128xbf16>
    %231 = arith.truncf %215 : vector<8x128xf32> to vector<8x128xbf16>
    %232 = arith.truncf %219 : vector<8x128xf32> to vector<8x128xbf16>
    %233 = tpu.concatenate %230, %231, %232 in 1 : vector<8x128xbf16>, vector<8x128xbf16>, vector<8x128xbf16> -> vector<8x384xbf16>
    %cst_116 = arith.constant dense<0.000000e+00> : vector<8x128xf32>
    %234 = tpu.matmul %233, %5, %cst_116 {dimension_numbers = #tpu.dot_dimension_numbers<[1], [0], [0], [1], [0, 0, 1, 1], [], []>} : vector<8x384xbf16>, vector<384x128xbf16>, vector<8x128xf32> -> vector<8x128xf32>
    %235 = vector.broadcast %7 : vector<1x128xf32> to vector<8x128xf32>
    %236 = arith.addf %234, %235 : vector<8x128xf32>
    %237 = vector.broadcast %4 : f32 to vector<8x128xf32>
    %238 = arith.mulf %237, %210 : vector<8x128xf32>
    %239 = vector.broadcast %3 : f32 to vector<8x128xf32>
    %240 = arith.mulf %239, %236 : vector<8x128xf32>
    %241 = arith.addf %238, %240 : vector<8x128xf32>
    %242 = arith.negf %241 : vector<8x128xf32>
    %243 = math.exp %242 : vector<8x128xf32>
    %cst_117 = arith.constant 1.000000e+00 : f32
    %244 = vector.broadcast %cst_117 : f32 to vector<8x128xf32>
    %245 = arith.addf %244, %243 : vector<8x128xf32>
    %246 = arith.divf %244, %245 : vector<8x128xf32>
    %247 = arith.truncf %246 : vector<8x128xf32> to vector<8x128xbf16>
    %cst_118 = arith.constant dense<0.000000e+00> : vector<8x128xf32>
    %248 = tpu.matmul %247, %6, %cst_118 {dimension_numbers = #tpu.dot_dimension_numbers<[1], [0], [0], [1], [0, 0, 1, 1], [], []>} : vector<8x128xbf16>, vector<128x128xbf16>, vector<8x128xf32> -> vector<8x128xf32>
    %249 = vector.broadcast %8 : vector<1x128xf32> to vector<8x128xf32>
    %250 = arith.addf %248, %249 : vector<8x128xf32>
    %c7_119 = arith.constant 7 : index
    %c0_120 = arith.constant 0 : index
    %c0_121 = arith.constant 0 : index
    %251 = vector.load %arg10[%c7_119, %c0_120, %c0_121] : memref<8x8x128xf32, #tpu.memory_space<vmem>>, vector<1x8x128xf32>
    %252 = vector.shape_cast %251 : vector<1x8x128xf32> to vector<8x128xf32>
    %253 = vector.shape_cast %250 : vector<8x128xf32> to vector<1x8x128xf32>
    tpu.vector_store %arg10[%c7_119, %c0_120, %c0_121], %253 {strides = array<i32>} : memref<8x8x128xf32, #tpu.memory_space<vmem>>, vector<1x8x128xf32>,
    %c7_122 = arith.constant 7 : index
    %c0_123 = arith.constant 0 : index
    %c0_124 = arith.constant 0 : index
    %254 = vector.load %arg11[%c7_122, %c0_123, %c0_124] : memref<8x8x128xf32, #tpu.memory_space<vmem>>, vector<1x8x128xf32>
    %255 = vector.shape_cast %254 : vector<1x8x128xf32> to vector<8x128xf32>
    %256 = vector.shape_cast %246 : vector<8x128xf32> to vector<1x8x128xf32>
    tpu.vector_store %arg11[%c7_122, %c0_123, %c0_124], %256 {strides = array<i32>} : memref<8x8x128xf32, #tpu.memory_space<vmem>>, vector<1x8x128xf32>,
    %c7_125 = arith.constant 7 : index
    %c0_126 = arith.constant 0 : index
    %c0_127 = arith.constant 0 : index
    %257 = vector.load %arg12[%c7_125, %c0_126, %c0_127] : memref<8x8x128xf32, #tpu.memory_space<vmem>>, vector<1x8x128xf32>
    %258 = vector.shape_cast %257 : vector<1x8x128xf32> to vector<8x128xf32>
    %259 = vector.shape_cast %241 : vector<8x128xf32> to vector<1x8x128xf32>
    tpu.vector_store %arg12[%c7_125, %c0_126, %c0_127], %259 {strides = array<i32>} : memref<8x8x128xf32, #tpu.memory_space<vmem>>, vector<1x8x128xf32>,
    %c0_128 = arith.constant 0 : index
    %c0_129 = arith.constant 0 : index
    %260 = vector.load %arg13[%c0_128, %c0_129] : memref<8x128xf32, #tpu.memory_space<vmem>>, vector<8x128xf32>
    tpu.vector_store %arg13[%c0_128, %c0_129], %246 {strides = array<i32>} : memref<8x128xf32, #tpu.memory_space<vmem>>, vector<8x128xf32>,
    %c0_130 = arith.constant 0 : index
    %c0_131 = arith.constant 0 : index
    %261 = vector.load %arg14[%c0_130, %c0_131] : memref<8x128xf32, #tpu.memory_space<vmem>>, vector<8x128xf32>
    tpu.vector_store %arg14[%c0_130, %c0_131], %250 {strides = array<i32>} : memref<8x128xf32, #tpu.memory_space<vmem>>, vector<8x128xf32>,
    %c0_132 = arith.constant 0 : index
    %c0_133 = arith.constant 0 : index
    %262 = vector.load %arg15[%c0_132, %c0_133] : memref<8x128xf32, #tpu.memory_space<vmem>>, vector<8x128xf32>
    tpu.vector_store %arg15[%c0_132, %c0_133], %241 {strides = array<i32>} : memref<8x128xf32, #tpu.memory_space<vmem>>, vector<8x128xf32>,
    return
  }
  func.func @transform_0(%arg0: i32) -> i32 {
    %c0_i32 = arith.constant 0 : i32
    %c0_i32_0 = arith.constant 0 : i32
    return %c0_i32 : i32
  }
  func.func @transform_1(%arg0: i32) -> (i32, i32, i32) {
    %c0_i32 = arith.constant 0 : i32
    %c0_i32_0 = arith.constant 0 : i32
    %c0_i32_1 = arith.constant 0 : i32
    return %arg0, %c0_i32, %c0_i32_0 : i32, i32, i32
  }
  func.func @transform_2(%arg0: i32) -> (i32, i32) {
    %c0_i32 = arith.constant 0 : i32
    %c0_i32_0 = arith.constant 0 : i32
    %c0_i32_1 = arith.constant 0 : i32
    return %c0_i32, %c0_i32_0 : i32, i32
  }
  func.func @transform_3(%arg0: i32) -> (i32, i32) {
    %c0_i32 = arith.constant 0 : i32
    %c0_i32_0 = arith.constant 0 : i32
    %c0_i32_1 = arith.constant 0 : i32
    return %c0_i32, %c0_i32_0 : i32, i32
  }
  func.func @transform_4(%arg0: i32) -> (i32, i32) {
    %c0_i32 = arith.constant 0 : i32
    %c0_i32_0 = arith.constant 0 : i32
    %c0_i32_1 = arith.constant 0 : i32
    return %c0_i32, %c0_i32_0 : i32, i32
  }
  func.func @transform_5(%arg0: i32) -> (i32, i32) {
    %c0_i32 = arith.constant 0 : i32
    %c0_i32_0 = arith.constant 0 : i32
    %c0_i32_1 = arith.constant 0 : i32
    return %c0_i32, %c0_i32_0 : i32, i32
  }
  func.func @transform_6(%arg0: i32) -> (i32, i32) {
    %c0_i32 = arith.constant 0 : i32
    %c0_i32_0 = arith.constant 0 : i32
    %c0_i32_1 = arith.constant 0 : i32
    return %c0_i32, %c0_i32_0 : i32, i32
  }
  func.func @transform_7(%arg0: i32) -> (i32, i32) {
    %c0_i32 = arith.constant 0 : i32
    %c0_i32_0 = arith.constant 0 : i32
    %c0_i32_1 = arith.constant 0 : i32
    return %c0_i32, %c0_i32_0 : i32, i32
  }
  func.func @transform_8(%arg0: i32) -> (i32, i32) {
    %c0_i32 = arith.constant 0 : i32
    %c0_i32_0 = arith.constant 0 : i32
    %c0_i32_1 = arith.constant 0 : i32
    return %c0_i32, %c0_i32_0 : i32, i32
  }
  func.func @transform_9(%arg0: i32) -> (i32, i32, i32) {
    %c0_i32 = arith.constant 0 : i32
    %c0_i32_0 = arith.constant 0 : i32
    %c0_i32_1 = arith.constant 0 : i32
    return %arg0, %c0_i32, %c0_i32_0 : i32, i32, i32
  }
  func.func @transform_10(%arg0: i32) -> (i32, i32, i32) {
    %c0_i32 = arith.constant 0 : i32
    %c0_i32_0 = arith.constant 0 : i32
    %c0_i32_1 = arith.constant 0 : i32
    return %arg0, %c0_i32, %c0_i32_0 : i32, i32, i32
  }
  func.func @transform_11(%arg0: i32) -> (i32, i32, i32) {
    %c0_i32 = arith.constant 0 : i32
    %c0_i32_0 = arith.constant 0 : i32
    %c0_i32_1 = arith.constant 0 : i32
    return %arg0, %c0_i32, %c0_i32_0 : i32, i32, i32
  }
}

</mosaic_0001>

<bundles_post_ra>
// kernel: tpu_custom_call.1
= control target key start
LH: loop header
LB: loop body
LE: loop exit
PB: predicated region body
PF: predicated region fallthrough
CT: control target
= control target key end

     0   :  { %18 = vsyncpa [#allocation7], 0  ;;  %s3331_s0 = inlined_call_operand.<no memory space> [shape: f32[1], index: 0, kind: input, shape index: {}]   ;;  %s3332_s1 = inlined_call_operand.hbm [shape: bf16[8,8,128], index: 1, kind: input, shape index: {}]   ;;  %s3333_s2 = inlined_call_operand.hbm [shape: f32[8,128], index: 2, kind: input, shape index: {}]   ;;  %s3334_s3 = inlined_call_operand.vmem [shape: f32[8,128], index: 3, kind: input, shape index: {}]   ;;  %s3335_s4 = inlined_call_operand.hbm [shape: f32[8,128], index: 4, kind: input, shape index: {}]   ;;  %s3336_s5 = inlined_call_operand.hbm [shape: bf16[384,128], index: 5, kind: input, shape index: {}]   ;;  %s3337_s6 = inlined_call_operand.vmem [shape: f32[1,128], index: 6, kind: input, shape index: {}]   ;;  %s3338_s7 = inlined_call_operand.hbm [shape: bf16[128,128], index: 7, kind: input, shape index: {}]   ;;  %s3339_s8 = inlined_call_operand.vmem [shape: f32[1,128], index: 8, kind: input, shape index: {}]   ;;  %s3340_s9 = inlined_call_operand.hbm [shape: f32[8,8,128], index: 9, kind: output, shape index: {0}]   ;;  %s3341_s10 = inlined_call_operand.hbm [shape: f32[8,8,128], index: 10, kind: output, shape index: {1}]   ;;  %s3342_s11 = inlined_call_operand.hbm [shape: f32[8,8,128], index: 11, kind: output, shape index: {2}]  }
   0x1   :  { %19 = vsyncpa [#allocation10], 0 }
   0x2   :  { %20 = vsyncpa [#allocation13], 0 }
   0x3   :  { %21 = vsyncpa [#allocation8], 0 }
   0x4   :  { %22 = vsyncpa [#allocation17], 0  ;;  %s2532_s17 = smov [#allocation9]   ;;  %s2346_s21 = scalar_lea.hbm %s3333_s2, 128 }
   0x5   :  { %s43_s18 = sshll.u32 %s2532_s17, 4  ;;  %p2347_p0 = scmp.ne.s32.totalorder %s3333_s2, %s2346_s21  ;;  %s44_s18 = int_to_ptr.vmem [resolvable:$true] %s43_s18 }
   0x6   :  { %p2350_p1 = scmp.lt.u32.totalorder %s2346_s21, %s3333_s2 }
   0x8   :  { %p2352_p2 = pnand %p2350_p1, %p2347_p0 }
   0xa   :  { %2355 = shalt.err (!%p2352_p2)
}
   0xb   :  { %s2356_s26 = scalar_lea.vmem %s44_s18, 128  ;;  %p2361_p4 = scmp.lt.s32.totalorder %s44_s18, %s44_s18 }
   0xc   :  { %p2357_p3 = scmp.ne.s32.totalorder %s44_s18, %s2356_s26  ;;  %p2362_p5 = scmp.lt.s32.totalorder %s2356_s26, %s2356_s26 }
   0xe   :  { %p2363_p6 = por %p2362_p5, %p2361_p4 }
  0x10   :  { %p2364_p7 = pnand %p2363_p6, %p2357_p3 }
  0x12   :  { %2367 = shalt.err (!%p2364_p7)
}
  0x13   :  { %46 = dma.hbm_to_vmem [thread:$0]  %s3333_s2, 128, %s44_s18, [#allocation10]  }
  0x14   :  { %s2533_s29 = smov [#allocation12]   ;;  %s2534_s12 = smov [#allocation6]  }
  0x15   :  { %s64_s30 = sshll.u32 %s2533_s29, 4  ;;  %s30_s13 = sshll.u32 %s2534_s12, 4  ;;  %s65_s30 = int_to_ptr.vmem [resolvable:$true] %s64_s30  ;;  %s31_s13 = int_to_ptr.vmem [resolvable:$true] %s30_s13 }
  0x16   :  { %s2368_s16 = scalar_lea.hbm %s3336_s5, 3072 }
  0x17   :  { %p2369_p8 = scmp.ne.s32.totalorder %s3336_s5, %s2368_s16  ;;  %p2372_p9 = scmp.lt.u32.totalorder %s2368_s16, %s3336_s5 }
  0x19   :  { %p2374_p10 = pnand %p2372_p9, %p2369_p8 }
  0x1b   :  { %2377 = shalt.err (!%p2374_p10)
}
  0x1c   :  { %s2378_s2 = scalar_lea.vmem %s65_s30, 3072  ;;  %p2383_p12 = scmp.lt.s32.totalorder %s65_s30, %s65_s30 }
  0x1d   :  { %p2379_p11 = scmp.ne.s32.totalorder %s65_s30, %s2378_s2  ;;  %p2384_p13 = scmp.lt.s32.totalorder %s2378_s2, %s2378_s2 }
  0x1f   :  { %p2385_p0 = por %p2384_p13, %p2383_p12 }
  0x21   :  { %p2386_p1 = pnand %p2385_p0, %p2379_p11 }
  0x23   :  { %2389 = shalt.err (!%p2386_p1)
}
  0x24   :  { %s2535_s18 = smov 64   ;;  %s2536_s22 = smov 4  }
  0x25   :  { %70 = dma.hbm_to_vmem [thread:$0]  %s3336_s5, 3072, %s65_s30, [#allocation13], %s2535_s18, %s2535_s18, %s2536_s22  }
  0x26   :  { %s2390_s27 = scalar_lea.hbm %s3332_s1, 512 }
  0x27   :  { %p2391_p2 = scmp.ne.s32.totalorder %s3332_s1, %s2390_s27  ;;  %p2394_p3 = scmp.lt.u32.totalorder %s2390_s27, %s3332_s1 }
  0x29   :  { %p2396_p4 = pnand %p2394_p3, %p2391_p2 }
  0x2b   :  { %2399 = shalt.err (!%p2396_p4)
}
  0x2c   :  { %s2400_s15 = scalar_lea.vmem %s31_s13, 512  ;;  %p2405_p6 = scmp.lt.s32.totalorder %s31_s13, %s31_s13 }
  0x2d   :  { %p2401_p5 = scmp.ne.s32.totalorder %s31_s13, %s2400_s15  ;;  %p2406_p7 = scmp.lt.s32.totalorder %s2400_s15, %s2400_s15 }
  0x2f   :  { %p2407_p8 = por %p2406_p7, %p2405_p6 }
  0x31   :  { %p2408_p9 = pnand %p2407_p8, %p2401_p5 }
  0x33   :  { %2411 = shalt.err (!%p2408_p9)
}
  0x34   :  { %36 = dma.hbm_to_vmem [thread:$0]  %s3332_s1, 512, %s31_s13, [#allocation7], %s2535_s18, %s2535_s18, %s2536_s22  }
  0x35   :  { %s2537_s16 = smov [#allocation11]   ;;  %s2538_s19 = smov [#allocation14]  }
  0x36   :  { %s55_s17 = sshll.u32 %s2537_s16, 4  ;;  %s78_s20 = sshll.u32 %s2538_s19, 4  ;;  %s56_s17 = int_to_ptr.vmem [resolvable:$true] %s55_s17  ;;  %s79_s20 = int_to_ptr.vmem [resolvable:$true] %s78_s20 }
  0x37   :  { %s2412_s23 = scalar_lea.hbm %s3335_s4, 128 }
  0x38   :  { %p2413_p10 = scmp.ne.s32.totalorder %s3335_s4, %s2412_s23  ;;  %p2416_p11 = scmp.lt.u32.totalorder %s2412_s23, %s3335_s4 }
  0x3a   :  { %p2418_p12 = pnand %p2416_p11, %p2413_p10 }
  0x3c   :  { %2421 = shalt.err (!%p2418_p12)
}
  0x3d   :  { %s2422_s1 = scalar_lea.vmem %s56_s17, 128  ;;  %p2427_p0 = scmp.lt.s32.totalorder %s56_s17, %s56_s17 }
  0x3e   :  { %p2423_p13 = scmp.ne.s32.totalorder %s56_s17, %s2422_s1  ;;  %p2428_p1 = scmp.lt.s32.totalorder %s2422_s1, %s2422_s1 }
  0x40   :  { %p2429_p2 = por %p2428_p1, %p2427_p0 }
  0x42   :  { %p2430_p3 = pnand %p2429_p2, %p2423_p13 }
  0x44   :  { %2433 = shalt.err (!%p2430_p3)
}
  0x45   :  { %58 = dma.hbm_to_vmem [thread:$0]  %s3335_s4, 128, %s56_s17, [#allocation10]  }
  0x46   :  { %s2434_s14 = scalar_lea.hbm %s3338_s7, 1024 }
  0x47   :  { %p2435_p4 = scmp.ne.s32.totalorder %s3338_s7, %s2434_s14  ;;  %p2438_p5 = scmp.lt.u32.totalorder %s2434_s14, %s3338_s7 }
  0x49   :  { %p2440_p6 = pnand %p2438_p5, %p2435_p4 }
  0x4b   :  { %2443 = shalt.err (!%p2440_p6)
}
  0x4c   :  { %s2444_s19 = scalar_lea.vmem %s79_s20, 1024  ;;  %p2449_p8 = scmp.lt.s32.totalorder %s79_s20, %s79_s20 }
  0x4d   :  { %p2445_p7 = scmp.ne.s32.totalorder %s79_s20, %s2444_s19  ;;  %p2450_p9 = scmp.lt.s32.totalorder %s2444_s19, %s2444_s19 }
  0x4f   :  { %p2451_p10 = por %p2450_p9, %p2449_p8 }
  0x51   :  { %p2452_p11 = pnand %p2451_p10, %p2445_p7 }
  0x53   :  { %2455 = shalt.err (!%p2452_p11)
}
  0x54   :  { %84 = dma.hbm_to_vmem [thread:$0]  %s3338_s7, 1024, %s79_s20, [#allocation13], %s2535_s18, %s2535_s18, %s2536_s22  }
  0x55   :  { %2522 = dma.done.wait [#allocation7], 512  }
  0x56   :  { %2523 = vsyncadd [#allocation7], 4294966784 }
  0x57   :  { %2524 = dma.done.wait [#allocation10], 256  }
  0x58   :  { %2525 = vsyncadd [#allocation10], 4294967040 }
  0x59   :  { %2526 = dma.done.wait [#allocation13], 4096  }
  0x5a   :  { %2527 = vsyncadd [#allocation13], 4294963200  ;;  %v2539_v0 = vmov 0.0   ;;  %vm2540_vm0 = vmmov 0   ;;  %v2678_v1 = vld [vmem:[#allocation12 + $0x40] sm:$0xff]   ;;  %v2686_v4 = vld [vmem:[#allocation12 + $0x48] sm:$0xff]   ;;  %v2826_v51 = vstv %s3331_s0 }
  0x5b   :  { %1914 = vmatprep.subr.bf16.mxu1 %v2539_v0  ;;  %1930 = vmatprep.mubr.msk.bf16.mxu1 %vm2540_vm0, %v2539_v0  ;;  %v2680_v2 = vld [vmem:[#allocation12] sm:$0xff]   ;;  %v2689_v5 = vld [vmem:[#allocation12 + $0x8] sm:$0xff]   ;;  %v2695_v7 = vld [vmem:[#allocation12 + $0x50] sm:$0xff]   ;;  %s114_s20 = ssub.f32 1.0, %s3331_s0 }
  0x5c   :  { %1594 = vmatprep.subr.bf16.mxu0 %v2678_v1  ;;  %v2683_v3 = vld [vmem:[#allocation12 + $0x80] sm:$0xff]   ;;  %v2693_v6 = vld [vmem:[#allocation12 + $0x88] sm:$0xff]   ;;  %v2698_v8 = vld [vmem:[#allocation12 + $0x10] sm:$0xff]  }
  0x5d   :  { %1595 = vmatpush3.bf16.msra.mxu0 %v2680_v2  ;;  %1915 = vmatpush3.bf16.msra.mxu1 %v2683_v3  ;;  %v2702_v9 = vld [vmem:[#allocation12 + $0x90] sm:$0xff]   ;;  %v2705_v10 = vld [vmem:[#allocation12 + $0x58] sm:$0xff]   ;;  %v2714_v13 = vld [vmem:[#allocation12 + $0x60] sm:$0xff]   ;;  %v2820_v46 = vstv %s114_s20 }
  0x5e   :  { %1596 = vmatprep.subr.bf16.mxu0 %v2686_v4  ;;  %1916 = vmatprep.subr.bf16.mxu1 %v2539_v0  ;;  %v2707_v11 = vld [vmem:[#allocation12 + $0x18] sm:$0xff]   ;;  %v2717_v14 = vld [vmem:[#allocation12 + $0x20] sm:$0xff]   ;;  %v2724_v16 = vld [vmem:[#allocation12 + $0x68] sm:$0xff]  }
  0x5f   :  { %v2710_v12 = vld [vmem:[#allocation12 + $0x98] sm:$0xff]   ;;  %v2720_v15 = vld [vmem:[#allocation12 + $0xa0] sm:$0xff]   ;;  %v2727_v17 = vld [vmem:[#allocation12 + $0x28] sm:$0xff]  }
  0x60   :  { %v2730_v18 = vld [vmem:[#allocation12 + $0xa8] sm:$0xff]   ;;  %v2734_v19 = vld [vmem:[#allocation12 + $0x70] sm:$0xff]   ;;  %v2744_v23 = vld [vmem:[#allocation12 + $0x78] sm:$0xff]  }
  0x61   :  { %1597 = vmatpush3.bf16.msra.mxu0 %v2689_v5  ;;  %1917 = vmatpush3.bf16.msra.mxu1 %v2693_v6  ;;  %v2737_v20 = vld [vmem:[#allocation12 + $0x30] sm:$0xff]   ;;  %v2747_v25 = vld [vmem:[#allocation12 + $0x38] sm:$0xff]   ;;  %v2780_v30 = vld [vmem:[#allocation14] sm:$0xff]  }
  0x62   :  { %1598 = vmatprep.subr.bf16.mxu0 %v2695_v7  ;;  %1918 = vmatprep.subr.bf16.mxu1 %v2539_v0  ;;  %v107_v21 = vld [vmem:[#allocation9] sm:$0xff]  ;;  %v2749_v26 = vld [vmem:[#allocation12 + $0xb8] sm:$0xff]   ;;  %v2784_v31 = vld [vmem:[#allocation14 + $0x8] sm:$0xff]  }
  0x63   :  { %v2742_v22 = vld [vmem:[#allocation12 + $0xb0] sm:$0xff]   ;;  %v185_v24 = vpack.c.bf16 %v107_v21, %v107_v21  ;;  %v2792_v33 = vld [vmem:[#allocation14 + $0x18] sm:$0xff]   ;;  %v2796_v34 = vld [vmem:[#allocation14 + $0x20] sm:$0xff]  }
  0x64   :  { %v109_v27 = vld [vmem:[%s3334_s3] sm:$0xff]  ;;  %v2800_v35 = vld [vmem:[#allocation14 + $0x28] sm:$0xff]   ;;  %v2808_v37 = vld [vmem:[#allocation14 + $0x38] sm:$0xff]  }
  0x65   :  { %1599 = vmatpush3.bf16.msra.mxu0 %v2698_v8  ;;  %1919 = vmatpush3.bf16.msra.mxu1 %v2702_v9  ;;  %v184_v28 = vld [vmem:[#allocation6] sm:$0xf]  ;;  %v186_v29 = vpack.c.bf16 %v109_v27, %v109_v27  ;;  %v111_v45 = vld [vmem:[#allocation11] sm:$0xff]  ;;  %v527_v61 = vld [vmem:[#allocation6 + $0x4] sm:$0xf] }
  0x66   :  { %1600 = vmatprep.subr.bf16.mxu0 %v2705_v10  ;;  %1920 = vmatprep.subr.bf16.mxu1 %v2539_v0  ;;  %v2788_v32 = vld [vmem:[#allocation14 + $0x10] sm:$0xff]   ;;  %v418_v53 = vmul.f32 %v2820_v46, %v111_v45 }
  0x67   :  { %369 = vmatprep.mubr.bf16.mxu0 %v185_v24  ;;  %v2804_v36 = vld [vmem:[#allocation14 + $0x30] sm:$0xff]  }
  0x68   :  { %v2818_v40 = vld [vmem:[%s3337_s6] ss:$0 sm:$0xff] }
  0x69   :  { %1601 = vmatpush3.bf16.msra.mxu0 %v2707_v11  ;;  %1921 = vmatpush3.bf16.msra.mxu1 %v2710_v12  ;;  %v2873_v62 = vld [vmem:[%s3339_s8] ss:$0 sm:$0xff] }
  0x6a   :  { %1602 = vmatprep.subr.bf16.mxu0 %v2714_v13  ;;  %1922 = vmatprep.subr.bf16.mxu1 %v2539_v0 }
  0x6d   :  { %1603 = vmatpush3.bf16.msra.mxu0 %v2717_v14  ;;  %1923 = vmatpush3.bf16.msra.mxu1 %v2720_v15 }
  0x6e   :  { %1604 = vmatprep.subr.bf16.mxu0 %v2724_v16  ;;  %1924 = vmatprep.subr.bf16.mxu1 %v2539_v0 }
  0x71   :  { %1605 = vmatpush3.bf16.msra.mxu0 %v2727_v17  ;;  %1925 = vmatpush3.bf16.msra.mxu1 %v2730_v18 }
  0x72   :  { %1606 = vmatprep.subr.bf16.mxu0 %v2734_v19  ;;  %1926 = vmatprep.subr.bf16.mxu1 %v2539_v0 }
  0x75   :  { %1607 = vmatpush3.bf16.msra.mxu0 %v2737_v20  ;;  %1927 = vmatpush3.bf16.msra.mxu1 %v2742_v22 }
  0x76   :  { %1608 = vmatprep.subr.bf16.mxu0 %v2744_v23  ;;  %1928 = vmatprep.subr.bf16.mxu1 %v2539_v0 }
  0x79   :  { %1609 = vmatpush3.bf16.msra.mxu0 %v2747_v25  ;;  %1929 = vmatpush3.bf16.msra.mxu1 %v2749_v26 }
  0x7a   :  { %1934 = vmatprep.subr.bf16.mxu0 %v2539_v0  ;;  %1634 = vmatprep.subr.bf16.mxu1 %v2678_v1 }
  0x7c   :  { %370 = vmatmul.mubr.bf16.vlgmr.msra.gmra.mrb[0].mxu0 %v184_v28  ;;  %1931 = vmatmul.mubr.bf16.vlgmr.msra.gmra.mrb[0].mxu1 %v186_v29 }
  0x7d   :  { %1950 = vmatprep.mubr.msk.bf16.mxu0 %vm2540_vm0, %v2539_v0  ;;  %1635 = vmatpush3.bf16.msra.mxu1 %v2680_v2 }
  0x7e   :  { %1636 = vmatprep.subr.bf16.mxu1 %v2686_v4  ;;  %1935 = vmatpush3.bf16.msra.mxu0 %v2780_v30 }
  0x7f   :  { %1936 = vmatprep.subr.bf16.mxu0 %v2539_v0 }
  0x81   :  { %1637 = vmatpush3.bf16.msra.mxu1 %v2689_v5 }
  0x82   :  { %1638 = vmatprep.subr.bf16.mxu1 %v2695_v7  ;;  %1937 = vmatpush3.bf16.msra.mxu0 %v2784_v31 }
  0x83   :  { %1938 = vmatprep.subr.bf16.mxu0 %v2539_v0 }
  0x85   :  { %1639 = vmatpush3.bf16.msra.mxu1 %v2698_v8 }
  0x86   :  { %1640 = vmatprep.subr.bf16.mxu1 %v2705_v10  ;;  %1939 = vmatpush3.bf16.msra.mxu0 %v2788_v32 }
  0x87   :  { %1940 = vmatprep.subr.bf16.mxu0 %v2539_v0 }
  0x89   :  { %1641 = vmatpush3.bf16.msra.mxu1 %v2707_v11 }
  0x8a   :  { %1642 = vmatprep.subr.bf16.mxu1 %v2714_v13  ;;  %1941 = vmatpush3.bf16.msra.mxu0 %v2792_v33 }
  0x8b   :  { %1942 = vmatprep.subr.bf16.mxu0 %v2539_v0 }
  0x8d   :  { %1643 = vmatpush3.bf16.msra.mxu1 %v2717_v14 }
  0x8e   :  { %1644 = vmatprep.subr.bf16.mxu1 %v2724_v16  ;;  %1943 = vmatpush3.bf16.msra.mxu0 %v2796_v34 }
  0x8f   :  { %1944 = vmatprep.subr.bf16.mxu0 %v2539_v0 }
  0x91   :  { %1645 = vmatpush3.bf16.msra.mxu1 %v2727_v17 }
  0x92   :  { %1646 = vmatprep.subr.bf16.mxu1 %v2734_v19  ;;  %1945 = vmatpush3.bf16.msra.mxu0 %v2800_v35 }
  0x93   :  { %1946 = vmatprep.subr.bf16.mxu0 %v2539_v0 }
  0x95   :  { %1647 = vmatpush3.bf16.msra.mxu1 %v2737_v20 }
  0x96   :  { %1648 = vmatprep.subr.bf16.mxu1 %v2744_v23  ;;  %1947 = vmatpush3.bf16.msra.mxu0 %v2804_v36 }
  0x97   :  { %1948 = vmatprep.subr.bf16.mxu0 %v2539_v0 }
  0x99   :  { %1649 = vmatpush3.bf16.msra.mxu1 %v2747_v25 }
  0x9a   :  { %1974 = vmatprep.subr.bf16.mxu1 %v2539_v0  ;;  %1949 = vmatpush3.bf16.msra.mxu0 %v2808_v37 }
  0x9b   :  { %1954 = vmatprep.subr.bf16.mxu0 %v2539_v0 }
 0x14f   :  { %v1610_v38 = vpop.f32.mrb[0].mxu0  ;;  %v411_v41 = vpop.f32.mrb[0].mxu1 }
 0x150   :  { %v1611_v39 = vpop.f32.mrb[1].mxu0  ;;  %v1932_v44 = vpop.f32.mrb[1].mxu1 }
 0x151   :  { %v1612_v42 = vadd.f32 %v1611_v39, %v1610_v38  ;;  %v1613_v43 = vpop.f32.mrb[2].mxu0  ;;  %v414_v48 = vpop.f32.mrb[2].mxu1 }
 0x152   :  { %v1614_v47 = vpop.f32.mrb[3].mxu0  ;;  %v1933_v50 = vpop.f32.mrb[3].mxu1 }
 0x153   :  { %v372_v49 = vadd.f32 %v1612_v42, %v2818_v40 }
 0x155   :  { %v412_v52 = vadd.f32 %v411_v41, %v372_v49 }
 0x157   :  { %v420_v54 = vmul.f32 %v2826_v51, %v412_v52 }
 0x159   :  { %v2830_v55 = vadd.f32 %v420_v54, %v418_v53 }
 0x15b   :  { %v1577_v56 = vmul.f32 -1.442695, %v2830_v55  ;;  %525 = vst [vmem:[#allocation18] sm:$0xff] %v2830_v55  ;;  %v609_v50 = vmul.f32 %v2830_v55, %v2820_v46 }
 0x15d   :  { %2280 = vpow2.f32 %v1577_v56 }
 0x167   :  { %v2281_v57 = vpop.eup %2280 }
 0x168   :  { %v425_v58 = vadd.f32 1.0, %v2281_v57 }
 0x16a   :  { %2282 = vrcp.f32 %v425_v58 }
 0x174   :  { %v2283_v59 = vpop.eup %2282 }
 0x175   :  { %524 = vst [vmem:[#allocation16] sm:$0xff] %v2283_v59  ;;  %v428_v60 = vpack.c.bf16 %v2283_v59, %v2283_v59 }
 0x177   :  { %1951 = vmatmul.mubr.bf16.vlgmr.msra.gmra.mrb[4].mxu0 %v428_v60  ;;  %561 = vmatprep.mubr.bf16.mxu1 %v428_v60 }
 0x178   :  { %1955 = vmatpush3.bf16.msra.mxu0 %v2683_v3  ;;  %562 = vmatmul.mubr.bf16.vlgmr.msra.gmra.mrb[4].mxu1 %v527_v61  ;;  %v666_v61 = vld [vmem:[#allocation6 + $0x8] sm:$0xf] }
 0x179   :  { %1956 = vmatprep.subr.bf16.mxu0 %v2539_v0  ;;  %1970 = vmatprep.mubr.msk.bf16.mxu0 %vm2540_vm0, %v2539_v0 }
 0x17a   :  { %1975 = vmatpush3.bf16.msra.mxu1 %v2780_v30  ;;  %1990 = vmatprep.mubr.msk.bf16.mxu1 %vm2540_vm0, %v2539_v0 }
 0x17b   :  { %1976 = vmatprep.subr.bf16.mxu1 %v2539_v0 }
 0x17c   :  { %1957 = vmatpush3.bf16.msra.mxu0 %v2693_v6 }
 0x17d   :  { %1958 = vmatprep.subr.bf16.mxu0 %v2539_v0 }
 0x17e   :  { %1977 = vmatpush3.bf16.msra.mxu1 %v2784_v31 }
 0x17f   :  { %1978 = vmatprep.subr.bf16.mxu1 %v2539_v0 }
 0x180   :  { %1959 = vmatpush3.bf16.msra.mxu0 %v2702_v9 }
 0x181   :  { %1960 = vmatprep.subr.bf16.mxu0 %v2539_v0 }
 0x182   :  { %1979 = vmatpush3.bf16.msra.mxu1 %v2788_v32 }
 0x183   :  { %1980 = vmatprep.subr.bf16.mxu1 %v2539_v0 }
 0x184   :  { %1961 = vmatpush3.bf16.msra.mxu0 %v2710_v12 }
 0x185   :  { %1962 = vmatprep.subr.bf16.mxu0 %v2539_v0 }
 0x186   :  { %1981 = vmatpush3.bf16.msra.mxu1 %v2792_v33 }
 0x187   :  { %1982 = vmatprep.subr.bf16.mxu1 %v2539_v0 }
 0x188   :  { %1963 = vmatpush3.bf16.msra.mxu0 %v2720_v15 }
 0x189   :  { %1964 = vmatprep.subr.bf16.mxu0 %v2539_v0 }
 0x18a   :  { %1983 = vmatpush3.bf16.msra.mxu1 %v2796_v34 }
 0x18b   :  { %1984 = vmatprep.subr.bf16.mxu1 %v2539_v0 }
 0x18c   :  { %1965 = vmatpush3.bf16.msra.mxu0 %v2730_v18 }
 0x18d   :  { %1966 = vmatprep.subr.bf16.mxu0 %v2539_v0 }
 0x18e   :  { %1985 = vmatpush3.bf16.msra.mxu1 %v2800_v35 }
 0x18f   :  { %1986 = vmatprep.subr.bf16.mxu1 %v2539_v0 }
 0x190   :  { %1967 = vmatpush3.bf16.msra.mxu0 %v2742_v22 }
 0x191   :  { %1968 = vmatprep.subr.bf16.mxu0 %v2539_v0 }
 0x192   :  { %1987 = vmatpush3.bf16.msra.mxu1 %v2804_v36 }
 0x193   :  { %1988 = vmatprep.subr.bf16.mxu1 %v2539_v0 }
 0x194   :  { %1969 = vmatpush3.bf16.msra.mxu0 %v2749_v26 }
 0x195   :  { %1674 = vmatprep.subr.bf16.mxu0 %v2678_v1 }
 0x196   :  { %1989 = vmatpush3.bf16.msra.mxu1 %v2808_v37 }
 0x197   :  { %1994 = vmatprep.subr.bf16.mxu1 %v2539_v0 }
 0x24a   :  { %v517_v63 = vpop.f32.mrb[4].mxu0 }
 0x24b   :  { %v518_v21 = vadd.f32 %v2873_v62, %v517_v63  ;;  %v1952_v24 = vpop.f32.mrb[5].mxu0  ;;  %v1650_v27 = vpop.f32.mrb[4].mxu1 }
 0x24c   :  { %v520_v28 = vpop.f32.mrb[6].mxu0  ;;  %v1651_v29 = vpop.f32.mrb[5].mxu1 }
 0x24d   :  { %523 = vst [vmem:[#allocation15] sm:$0xff] %v518_v21  ;;  %v528_v38 = vpack.c.bf16 %v518_v21, %v518_v21  ;;  %v1953_v39 = vpop.f32.mrb[7].mxu0  ;;  %v1652_v41 = vadd.f32 %v1651_v29, %v1650_v27  ;;  %v1653_v42 = vpop.f32.mrb[6].mxu1 }
 0x24e   :  { %v1654_v43 = vpop.f32.mrb[7].mxu1 }
 0x24f   :  { %1971 = vmatmul.mubr.bf16.vlgmr.msra.gmra.mrb[8].mxu0 %v528_v38  ;;  %v564_v44 = vadd.f32 %v1652_v41, %v2818_v40 }
 0x250   :  { %1675 = vmatpush3.bf16.msra.mxu0 %v2680_v2 }
 0x251   :  { %1676 = vmatprep.subr.bf16.mxu0 %v2686_v4 }
 0x254   :  { %1677 = vmatpush3.bf16.msra.mxu0 %v2689_v5 }
 0x255   :  { %1678 = vmatprep.subr.bf16.mxu0 %v2695_v7 }
 0x258   :  { %1679 = vmatpush3.bf16.msra.mxu0 %v2698_v8 }
 0x259   :  { %1680 = vmatprep.subr.bf16.mxu0 %v2705_v10 }
 0x25c   :  { %1681 = vmatpush3.bf16.msra.mxu0 %v2707_v11 }
 0x25d   :  { %1682 = vmatprep.subr.bf16.mxu0 %v2714_v13 }
 0x260   :  { %1683 = vmatpush3.bf16.msra.mxu0 %v2717_v14 }
 0x261   :  { %1684 = vmatprep.subr.bf16.mxu0 %v2724_v16 }
 0x264   :  { %1685 = vmatpush3.bf16.msra.mxu0 %v2727_v17 }
 0x265   :  { %1686 = vmatprep.subr.bf16.mxu0 %v2734_v19 }
 0x268   :  { %1687 = vmatpush3.bf16.msra.mxu0 %v2737_v20 }
 0x269   :  { %1688 = vmatprep.subr.bf16.mxu0 %v2744_v23 }
 0x26c   :  { %1689 = vmatpush3.bf16.msra.mxu0 %v2747_v25 }
 0x26d   :  { %2014 = vmatprep.subr.bf16.mxu0 %v2539_v0 }
 0x322   :  { %v603_v45 = vpop.f32.mrb[8].mxu0 }
 0x323   :  { %v604_v47 = vadd.f32 %v603_v45, %v564_v44  ;;  %v1972_v48 = vpop.f32.mrb[9].mxu0 }
 0x324   :  { %v606_v49 = vpop.f32.mrb[10].mxu0 }
 0x325   :  { %v610_v52 = vmul.f32 %v604_v47, %v2826_v51  ;;  %v1973_v53 = vpop.f32.mrb[11].mxu0 }
 0x327   :  { %v2896_v54 = vadd.f32 %v610_v52, %v609_v50 }
 0x329   :  { %v1587_v56 = vmul.f32 -1.442695, %v2896_v54  ;;  %664 = vst [vmem:[#allocation18 + $0x8] sm:$0xff] %v2896_v54  ;;  %v748_v49 = vmul.f32 %v2896_v54, %v2820_v46 }
 0x32b   :  { %2284 = vpow2.f32 %v1587_v56 }
 0x335   :  { %v2285_v57 = vpop.eup %2284 }
 0x336   :  { %v615_v58 = vadd.f32 1.0, %v2285_v57 }
 0x338   :  { %2286 = vrcp.f32 %v615_v58 }
 0x342   :  { %v2287_v59 = vpop.eup %2286 }
 0x343   :  { %662 = vst [vmem:[#allocation16 + $0x8] sm:$0xff] %v2287_v59  ;;  %v618_v60 = vpack.c.bf16 %v2287_v59, %v2287_v59 }
 0x345   :  { %1991 = vmatmul.mubr.bf16.vlgmr.msra.gmra.mrb[8].mxu1 %v618_v60  ;;  %700 = vmatprep.mubr.bf16.mxu0 %v618_v60 }
 0x346   :  { %1995 = vmatpush3.bf16.msra.mxu1 %v2683_v3  ;;  %701 = vmatmul.mubr.bf16.vlgmr.msra.gmra.mrb[12].mxu0 %v666_v61  ;;  %v805_v61 = vld [vmem:[#allocation6 + $0xc] sm:$0xf] }
 0x347   :  { %1996 = vmatprep.subr.bf16.mxu1 %v2539_v0  ;;  %2010 = vmatprep.mubr.msk.bf16.mxu1 %vm2540_vm0, %v2539_v0 }
 0x348   :  { %2015 = vmatpush3.bf16.msra.mxu0 %v2780_v30  ;;  %2030 = vmatprep.mubr.msk.bf16.mxu0 %vm2540_vm0, %v2539_v0 }
 0x349   :  { %2016 = vmatprep.subr.bf16.mxu0 %v2539_v0 }
 0x34a   :  { %1997 = vmatpush3.bf16.msra.mxu1 %v2693_v6 }
 0x34b   :  { %1998 = vmatprep.subr.bf16.mxu1 %v2539_v0 }
 0x34c   :  { %2017 = vmatpush3.bf16.msra.mxu0 %v2784_v31 }
 0x34d   :  { %2018 = vmatprep.subr.bf16.mxu0 %v2539_v0 }
 0x34e   :  { %1999 = vmatpush3.bf16.msra.mxu1 %v2702_v9 }
 0x34f   :  { %2000 = vmatprep.subr.bf16.mxu1 %v2539_v0 }
 0x350   :  { %2019 = vmatpush3.bf16.msra.mxu0 %v2788_v32 }
 0x351   :  { %2020 = vmatprep.subr.bf16.mxu0 %v2539_v0 }
 0x352   :  { %2001 = vmatpush3.bf16.msra.mxu1 %v2710_v12 }
 0x353   :  { %2002 = vmatprep.subr.bf16.mxu1 %v2539_v0 }
 0x354   :  { %2021 = vmatpush3.bf16.msra.mxu0 %v2792_v33 }
 0x355   :  { %2022 = vmatprep.subr.bf16.mxu0 %v2539_v0 }
 0x356   :  { %2003 = vmatpush3.bf16.msra.mxu1 %v2720_v15 }
 0x357   :  { %2004 = vmatprep.subr.bf16.mxu1 %v2539_v0 }
 0x358   :  { %2023 = vmatpush3.bf16.msra.mxu0 %v2796_v34 }
 0x359   :  { %2024 = vmatprep.subr.bf16.mxu0 %v2539_v0 }
 0x35a   :  { %2005 = vmatpush3.bf16.msra.mxu1 %v2730_v18 }
 0x35b   :  { %2006 = vmatprep.subr.bf16.mxu1 %v2539_v0 }
 0x35c   :  { %2025 = vmatpush3.bf16.msra.mxu0 %v2800_v35 }
 0x35d   :  { %2026 = vmatprep.subr.bf16.mxu0 %v2539_v0 }
 0x35e   :  { %2007 = vmatpush3.bf16.msra.mxu1 %v2742_v22 }
 0x35f   :  { %2008 = vmatprep.subr.bf16.mxu1 %v2539_v0 }
 0x360   :  { %2027 = vmatpush3.bf16.msra.mxu0 %v2804_v36 }
 0x361   :  { %2028 = vmatprep.subr.bf16.mxu0 %v2539_v0 }
 0x362   :  { %2009 = vmatpush3.bf16.msra.mxu1 %v2749_v26 }
 0x363   :  { %1714 = vmatprep.subr.bf16.mxu1 %v2678_v1 }
 0x364   :  { %2029 = vmatpush3.bf16.msra.mxu0 %v2808_v37 }
 0x365   :  { %2034 = vmatprep.subr.bf16.mxu0 %v2539_v0 }
 0x418   :  { %v653_v55 = vpop.f32.mrb[8].mxu1 }
 0x419   :  { %v654_v63 = vadd.f32 %v2873_v62, %v653_v55  ;;  %v1992_v21 = vpop.f32.mrb[9].mxu1  ;;  %v1690_v24 = vpop.f32.mrb[12].mxu0 }
 0x41a   :  { %v656_v27 = vpop.f32.mrb[10].mxu1  ;;  %v1691_v28 = vpop.f32.mrb[13].mxu0 }
 0x41b   :  { %660 = vst [vmem:[#allocation15 + $0x8] sm:$0xff] %v654_v63  ;;  %v667_v29 = vpack.c.bf16 %v654_v63, %v654_v63  ;;  %v1993_v38 = vpop.f32.mrb[11].mxu1  ;;  %v1692_v39 = vadd.f32 %v1691_v28, %v1690_v24  ;;  %v1693_v41 = vpop.f32.mrb[14].mxu0 }
 0x41c   :  { %v1694_v42 = vpop.f32.mrb[15].mxu0 }
 0x41d   :  { %2011 = vmatmul.mubr.bf16.vlgmr.msra.gmra.mrb[12].mxu1 %v667_v29  ;;  %v703_v43 = vadd.f32 %v1692_v39, %v2818_v40 }
 0x41e   :  { %1715 = vmatpush3.bf16.msra.mxu1 %v2680_v2 }
 0x41f   :  { %1716 = vmatprep.subr.bf16.mxu1 %v2686_v4 }
 0x422   :  { %1717 = vmatpush3.bf16.msra.mxu1 %v2689_v5 }
 0x423   :  { %1718 = vmatprep.subr.bf16.mxu1 %v2695_v7 }
 0x426   :  { %1719 = vmatpush3.bf16.msra.mxu1 %v2698_v8 }
 0x427   :  { %1720 = vmatprep.subr.bf16.mxu1 %v2705_v10 }
 0x42a   :  { %1721 = vmatpush3.bf16.msra.mxu1 %v2707_v11 }
 0x42b   :  { %1722 = vmatprep.subr.bf16.mxu1 %v2714_v13 }
 0x42e   :  { %1723 = vmatpush3.bf16.msra.mxu1 %v2717_v14 }
 0x42f   :  { %1724 = vmatprep.subr.bf16.mxu1 %v2724_v16 }
 0x432   :  { %1725 = vmatpush3.bf16.msra.mxu1 %v2727_v17 }
 0x433   :  { %1726 = vmatprep.subr.bf16.mxu1 %v2734_v19 }
 0x436   :  { %1727 = vmatpush3.bf16.msra.mxu1 %v2737_v20 }
 0x437   :  { %1728 = vmatprep.subr.bf16.mxu1 %v2744_v23 }
 0x43a   :  { %1729 = vmatpush3.bf16.msra.mxu1 %v2747_v25 }
 0x43b   :  { %2054 = vmatprep.subr.bf16.mxu1 %v2539_v0 }
 0x4f0   :  { %v742_v44 = vpop.f32.mrb[12].mxu1 }
 0x4f1   :  { %v743_v45 = vadd.f32 %v742_v44, %v703_v43  ;;  %v2012_v47 = vpop.f32.mrb[13].mxu1 }
 0x4f2   :  { %v745_v48 = vpop.f32.mrb[14].mxu1 }
 0x4f3   :  { %v749_v50 = vmul.f32 %v743_v45, %v2826_v51  ;;  %v2013_v52 = vpop.f32.mrb[15].mxu1 }
 0x4f5   :  { %v2957_v53 = vadd.f32 %v749_v50, %v748_v49 }
 0x4f7   :  { %v1588_v56 = vmul.f32 -1.442695, %v2957_v53  ;;  %803 = vst [vmem:[#allocation18 + $0x10] sm:$0xff] %v2957_v53  ;;  %v887_v48 = vmul.f32 %v2957_v53, %v2820_v46 }
 0x4f9   :  { %2288 = vpow2.f32 %v1588_v56 }
 0x503   :  { %v2289_v57 = vpop.eup %2288 }
 0x504   :  { %v754_v58 = vadd.f32 1.0, %v2289_v57 }
 0x506   :  { %2290 = vrcp.f32 %v754_v58 }
 0x510   :  { %v2291_v59 = vpop.eup %2290 }
 0x511   :  { %801 = vst [vmem:[#allocation16 + $0x10] sm:$0xff] %v2291_v59  ;;  %v757_v60 = vpack.c.bf16 %v2291_v59, %v2291_v59 }
 0x513   :  { %2031 = vmatmul.mubr.bf16.vlgmr.msra.gmra.mrb[16].mxu0 %v757_v60  ;;  %839 = vmatprep.mubr.bf16.mxu1 %v757_v60 }
 0x514   :  { %2035 = vmatpush3.bf16.msra.mxu0 %v2683_v3  ;;  %840 = vmatmul.mubr.bf16.vlgmr.msra.gmra.mrb[16].mxu1 %v805_v61  ;;  %v944_v61 = vld [vmem:[#allocation6 + $0x10] sm:$0xf] }
 0x515   :  { %2036 = vmatprep.subr.bf16.mxu0 %v2539_v0  ;;  %2050 = vmatprep.mubr.msk.bf16.mxu0 %vm2540_vm0, %v2539_v0 }
 0x516   :  { %2055 = vmatpush3.bf16.msra.mxu1 %v2780_v30  ;;  %2070 = vmatprep.mubr.msk.bf16.mxu1 %vm2540_vm0, %v2539_v0 }
 0x517   :  { %2056 = vmatprep.subr.bf16.mxu1 %v2539_v0 }
 0x518   :  { %2037 = vmatpush3.bf16.msra.mxu0 %v2693_v6 }
 0x519   :  { %2038 = vmatprep.subr.bf16.mxu0 %v2539_v0 }
 0x51a   :  { %2057 = vmatpush3.bf16.msra.mxu1 %v2784_v31 }
 0x51b   :  { %2058 = vmatprep.subr.bf16.mxu1 %v2539_v0 }
 0x51c   :  { %2039 = vmatpush3.bf16.msra.mxu0 %v2702_v9 }
 0x51d   :  { %2040 = vmatprep.subr.bf16.mxu0 %v2539_v0 }
 0x51e   :  { %2059 = vmatpush3.bf16.msra.mxu1 %v2788_v32 }
 0x51f   :  { %2060 = vmatprep.subr.bf16.mxu1 %v2539_v0 }
 0x520   :  { %2041 = vmatpush3.bf16.msra.mxu0 %v2710_v12 }
 0x521   :  { %2042 = vmatprep.subr.bf16.mxu0 %v2539_v0 }
 0x522   :  { %2061 = vmatpush3.bf16.msra.mxu1 %v2792_v33 }
 0x523   :  { %2062 = vmatprep.subr.bf16.mxu1 %v2539_v0 }
 0x524   :  { %2043 = vmatpush3.bf16.msra.mxu0 %v2720_v15 }
 0x525   :  { %2044 = vmatprep.subr.bf16.mxu0 %v2539_v0 }
 0x526   :  { %2063 = vmatpush3.bf16.msra.mxu1 %v2796_v34 }
 0x527   :  { %2064 = vmatprep.subr.bf16.mxu1 %v2539_v0 }
 0x528   :  { %2045 = vmatpush3.bf16.msra.mxu0 %v2730_v18 }
 0x529   :  { %2046 = vmatprep.subr.bf16.mxu0 %v2539_v0 }
 0x52a   :  { %2065 = vmatpush3.bf16.msra.mxu1 %v2800_v35 }
 0x52b   :  { %2066 = vmatprep.subr.bf16.mxu1 %v2539_v0 }
 0x52c   :  { %2047 = vmatpush3.bf16.msra.mxu0 %v2742_v22 }
 0x52d   :  { %2048 = vmatprep.subr.bf16.mxu0 %v2539_v0 }
 0x52e   :  { %2067 = vmatpush3.bf16.msra.mxu1 %v2804_v36 }
 0x52f   :  { %2068 = vmatprep.subr.bf16.mxu1 %v2539_v0 }
 0x530   :  { %2049 = vmatpush3.bf16.msra.mxu0 %v2749_v26 }
 0x531   :  { %1754 = vmatprep.subr.bf16.mxu0 %v2678_v1 }
 0x532   :  { %2069 = vmatpush3.bf16.msra.mxu1 %v2808_v37 }
 0x533   :  { %2074 = vmatprep.subr.bf16.mxu1 %v2539_v0 }
 0x5e6   :  { %v792_v54 = vpop.f32.mrb[16].mxu0 }
 0x5e7   :  { %v793_v55 = vadd.f32 %v2873_v62, %v792_v54  ;;  %v2032_v63 = vpop.f32.mrb[17].mxu0  ;;  %v1730_v21 = vpop.f32.mrb[16].mxu1 }
 0x5e8   :  { %v795_v24 = vpop.f32.mrb[18].mxu0  ;;  %v1731_v27 = vpop.f32.mrb[17].mxu1 }
 0x5e9   :  { %799 = vst [vmem:[#allocation15 + $0x10] sm:$0xff] %v793_v55  ;;  %v806_v28 = vpack.c.bf16 %v793_v55, %v793_v55  ;;  %v2033_v29 = vpop.f32.mrb[19].mxu0  ;;  %v1732_v38 = vadd.f32 %v1731_v27, %v1730_v21  ;;  %v1733_v39 = vpop.f32.mrb[18].mxu1 }
 0x5ea   :  { %v1734_v41 = vpop.f32.mrb[19].mxu1  ;;  %v3083_v29 = vld [vmem:[#allocation12 + $0x80] sm:$0xff]   ;;  %v3099_v39 = vld [vmem:[#allocation12 + $0x90] sm:$0xff]  }
 0x5eb   :  { %2051 = vmatmul.mubr.bf16.vlgmr.msra.gmra.mrb[20].mxu0 %v806_v28  ;;  %v842_v42 = vadd.f32 %v1732_v38, %v2818_v40  ;;  %v1083_v28 = vld [vmem:[#allocation6 + $0x14] sm:$0xf]  ;;  %v3093_v38 = vld [vmem:[#allocation12 + $0x88] sm:$0xff]   ;;  %v3105_v41 = vld [vmem:[#allocation12 + $0x98] sm:$0xff]  }
 0x5ec   :  { %1755 = vmatpush3.bf16.msra.mxu0 %v2680_v2 }
 0x5ed   :  { %1756 = vmatprep.subr.bf16.mxu0 %v2686_v4 }
 0x5f0   :  { %1757 = vmatpush3.bf16.msra.mxu0 %v2689_v5 }
 0x5f1   :  { %1758 = vmatprep.subr.bf16.mxu0 %v2695_v7 }
 0x5f4   :  { %1759 = vmatpush3.bf16.msra.mxu0 %v2698_v8 }
 0x5f5   :  { %1760 = vmatprep.subr.bf16.mxu0 %v2705_v10 }
 0x5f8   :  { %1761 = vmatpush3.bf16.msra.mxu0 %v2707_v11 }
 0x5f9   :  { %1762 = vmatprep.subr.bf16.mxu0 %v2714_v13 }
 0x5fc   :  { %1763 = vmatpush3.bf16.msra.mxu0 %v2717_v14 }
 0x5fd   :  { %1764 = vmatprep.subr.bf16.mxu0 %v2724_v16 }
 0x600   :  { %1765 = vmatpush3.bf16.msra.mxu0 %v2727_v17 }
 0x601   :  { %1766 = vmatprep.subr.bf16.mxu0 %v2734_v19 }
 0x604   :  { %1767 = vmatpush3.bf16.msra.mxu0 %v2737_v20 }
 0x605   :  { %1768 = vmatprep.subr.bf16.mxu0 %v2744_v23 }
 0x608   :  { %1769 = vmatpush3.bf16.msra.mxu0 %v2747_v25 }
 0x609   :  { %2094 = vmatprep.subr.bf16.mxu0 %v2539_v0 }
 0x6be   :  { %v881_v43 = vpop.f32.mrb[20].mxu0 }
 0x6bf   :  { %v882_v44 = vadd.f32 %v881_v43, %v842_v42  ;;  %v2052_v45 = vpop.f32.mrb[21].mxu0 }
 0x6c0   :  { %v884_v47 = vpop.f32.mrb[22].mxu0 }
 0x6c1   :  { %v888_v49 = vmul.f32 %v882_v44, %v2826_v51  ;;  %v2053_v50 = vpop.f32.mrb[23].mxu0 }
 0x6c3   :  { %v3018_v52 = vadd.f32 %v888_v49, %v887_v48 }
 0x6c5   :  { %v1589_v56 = vmul.f32 -1.442695, %v3018_v52  ;;  %942 = vst [vmem:[#allocation18 + $0x18] sm:$0xff] %v3018_v52 }
 0x6c7   :  { %2292 = vpow2.f32 %v1589_v56  ;;  %v3133_v56 = vld [vmem:[#allocation12 + $0x48] sm:$0xff]  }
 0x6d1   :  { %v2293_v57 = vpop.eup %2292 }
 0x6d2   :  { %v893_v58 = vadd.f32 1.0, %v2293_v57  ;;  %v3136_v57 = vld [vmem:[#allocation12 + $0x8] sm:$0xff]  }
 0x6d4   :  { %2294 = vrcp.f32 %v893_v58  ;;  %v3139_v58 = vld [vmem:[#allocation12 + $0x50] sm:$0xff]  }
 0x6de   :  { %v2295_v59 = vpop.eup %2294 }
 0x6df   :  { %940 = vst [vmem:[#allocation16 + $0x18] sm:$0xff] %v2295_v59  ;;  %v896_v60 = vpack.c.bf16 %v2295_v59, %v2295_v59  ;;  %v3142_v59 = vld [vmem:[#allocation12 + $0x10] sm:$0xff]  }
 0x6e1   :  { %2071 = vmatmul.mubr.bf16.vlgmr.msra.gmra.mrb[20].mxu1 %v896_v60  ;;  %978 = vmatprep.mubr.bf16.mxu0 %v896_v60  ;;  %v3145_v60 = vld [vmem:[#allocation12 + $0x58] sm:$0xff]  }
 0x6e2   :  { %2075 = vmatpush3.bf16.msra.mxu1 %v2683_v3  ;;  %979 = vmatmul.mubr.bf16.vlgmr.msra.gmra.mrb[24].mxu0 %v944_v61  ;;  %v3148_v61 = vld [vmem:[#allocation12 + $0x18] sm:$0xff]  }
 0x6e3   :  { %2076 = vmatprep.subr.bf16.mxu1 %v2539_v0  ;;  %2090 = vmatprep.mubr.msk.bf16.mxu1 %vm2540_vm0, %v2539_v0 }
 0x6e4   :  { %2095 = vmatpush3.bf16.msra.mxu0 %v2780_v30  ;;  %2110 = vmatprep.mubr.msk.bf16.mxu0 %vm2540_vm0, %v2539_v0 }
 0x6e5   :  { %2096 = vmatprep.subr.bf16.mxu0 %v2539_v0 }
 0x6e6   :  { %2077 = vmatpush3.bf16.msra.mxu1 %v2693_v6 }
 0x6e7   :  { %2078 = vmatprep.subr.bf16.mxu1 %v2539_v0 }
 0x6e8   :  { %2097 = vmatpush3.bf16.msra.mxu0 %v2784_v31 }
 0x6e9   :  { %2098 = vmatprep.subr.bf16.mxu0 %v2539_v0 }
 0x6ea   :  { %2079 = vmatpush3.bf16.msra.mxu1 %v2702_v9 }
 0x6eb   :  { %2080 = vmatprep.subr.bf16.mxu1 %v2539_v0 }
 0x6ec   :  { %2099 = vmatpush3.bf16.msra.mxu0 %v2788_v32 }
 0x6ed   :  { %2100 = vmatprep.subr.bf16.mxu0 %v2539_v0 }
 0x6ee   :  { %2081 = vmatpush3.bf16.msra.mxu1 %v2710_v12 }
 0x6ef   :  { %2082 = vmatprep.subr.bf16.mxu1 %v2539_v0 }
 0x6f0   :  { %2101 = vmatpush3.bf16.msra.mxu0 %v2792_v33 }
 0x6f1   :  { %2102 = vmatprep.subr.bf16.mxu0 %v2539_v0 }
 0x6f2   :  { %2083 = vmatpush3.bf16.msra.mxu1 %v2720_v15 }
 0x6f3   :  { %2084 = vmatprep.subr.bf16.mxu1 %v2539_v0 }
 0x6f4   :  { %2103 = vmatpush3.bf16.msra.mxu0 %v2796_v34 }
 0x6f5   :  { %2104 = vmatprep.subr.bf16.mxu0 %v2539_v0 }
 0x6f6   :  { %2085 = vmatpush3.bf16.msra.mxu1 %v2730_v18 }
 0x6f7   :  { %2086 = vmatprep.subr.bf16.mxu1 %v2539_v0 }
 0x6f8   :  { %2105 = vmatpush3.bf16.msra.mxu0 %v2800_v35 }
 0x6f9   :  { %2106 = vmatprep.subr.bf16.mxu0 %v2539_v0 }
 0x6fa   :  { %2087 = vmatpush3.bf16.msra.mxu1 %v2742_v22 }
 0x6fb   :  { %2088 = vmatprep.subr.bf16.mxu1 %v2539_v0 }
 0x6fc   :  { %2107 = vmatpush3.bf16.msra.mxu0 %v2804_v36 }
 0x6fd   :  { %2108 = vmatprep.subr.bf16.mxu0 %v2539_v0 }
 0x6fe   :  { %2089 = vmatpush3.bf16.msra.mxu1 %v2749_v26 }
 0x6ff   :  { %1794 = vmatprep.subr.bf16.mxu1 %v2678_v1 }
 0x700   :  { %2109 = vmatpush3.bf16.msra.mxu0 %v2808_v37 }
 0x701   :  { %2114 = vmatprep.subr.bf16.mxu0 %v2539_v0 }
 0x7b4   :  { %v931_v3 = vpop.f32.mrb[20].mxu1 }
 0x7b5   :  { %v932_v6 = vadd.f32 %v2873_v62, %v931_v3  ;;  %v2072_v9 = vpop.f32.mrb[21].mxu1  ;;  %v1770_v12 = vpop.f32.mrb[24].mxu0  ;;  %v3151_v3 = vld [vmem:[#allocation12 + $0x60] sm:$0xff]  }
 0x7b6   :  { %v934_v53 = vpop.f32.mrb[22].mxu1  ;;  %v1771_v54 = vpop.f32.mrb[25].mxu0  ;;  %v3157_v9 = vld [vmem:[#allocation12 + $0x68] sm:$0xff]  }
 0x7b7   :  { %938 = vst [vmem:[#allocation15 + $0x18] sm:$0xff] %v932_v6  ;;  %v945_v55 = vpack.c.bf16 %v932_v6, %v932_v6  ;;  %v2073_v63 = vpop.f32.mrb[23].mxu1  ;;  %v1772_v21 = vadd.f32 %v1771_v54, %v1770_v12  ;;  %v1773_v24 = vpop.f32.mrb[26].mxu0  ;;  %v3154_v6 = vld [vmem:[#allocation12 + $0x20] sm:$0xff]   ;;  %v3160_v12 = vld [vmem:[#allocation12 + $0x28] sm:$0xff]   ;;  %v3163_v53 = vld [vmem:[#allocation12 + $0x70] sm:$0xff]  }
 0x7b8   :  { %v1774_v27 = vpop.f32.mrb[27].mxu0  ;;  %v3166_v54 = vld [vmem:[#allocation12 + $0x30] sm:$0xff]  }
 0x7b9   :  { %2091 = vmatmul.mubr.bf16.vlgmr.msra.gmra.mrb[24].mxu1 %v945_v55  ;;  %v981_v1 = vadd.f32 %v1772_v21, %v2818_v40 }
 0x7ba   :  { %1795 = vmatpush3.bf16.msra.mxu1 %v2680_v2 }
 0x7bb   :  { %1796 = vmatprep.subr.bf16.mxu1 %v2686_v4 }
 0x7be   :  { %1797 = vmatpush3.bf16.msra.mxu1 %v2689_v5 }
 0x7bf   :  { %1798 = vmatprep.subr.bf16.mxu1 %v2695_v7 }
 0x7c2   :  { %1799 = vmatpush3.bf16.msra.mxu1 %v2698_v8  ;;  %v1026_v8 = vmul.f32 %v3018_v52, %v2820_v46  ;;  %v3130_v52 = vld [vmem:[#allocation12] sm:$0xff]  }
 0x7c3   :  { %1800 = vmatprep.subr.bf16.mxu1 %v2705_v10 }
 0x7c6   :  { %1801 = vmatpush3.bf16.msra.mxu1 %v2707_v11 }
 0x7c7   :  { %1802 = vmatprep.subr.bf16.mxu1 %v2714_v13 }
 0x7ca   :  { %1803 = vmatpush3.bf16.msra.mxu1 %v2717_v14 }
 0x7cb   :  { %1804 = vmatprep.subr.bf16.mxu1 %v2724_v16 }
 0x7ce   :  { %1805 = vmatpush3.bf16.msra.mxu1 %v2727_v17 }
 0x7cf   :  { %1806 = vmatprep.subr.bf16.mxu1 %v2734_v19 }
 0x7d2   :  { %1807 = vmatpush3.bf16.msra.mxu1 %v2737_v20 }
 0x7d3   :  { %1808 = vmatprep.subr.bf16.mxu1 %v2744_v23 }
 0x7d6   :  { %1809 = vmatpush3.bf16.msra.mxu1 %v2747_v25 }
 0x7d7   :  { %2134 = vmatprep.subr.bf16.mxu1 %v2539_v0 }
 0x88c   :  { %v1020_v2 = vpop.f32.mrb[24].mxu1 }
 0x88d   :  { %v1021_v4 = vadd.f32 %v1020_v2, %v981_v1  ;;  %v2092_v5 = vpop.f32.mrb[25].mxu1 }
 0x88e   :  { %v1023_v7 = vpop.f32.mrb[26].mxu1 }
 0x88f   :  { %v1027_v10 = vmul.f32 %v1021_v4, %v2826_v51  ;;  %v2093_v11 = vpop.f32.mrb[27].mxu1 }
 0x891   :  { %v3079_v13 = vadd.f32 %v1027_v10, %v1026_v8  ;;  %v1222_v10 = vld [vmem:[#allocation6 + $0x18] sm:$0xf] }
 0x893   :  { %v1590_v14 = vmul.f32 -1.442695, %v3079_v13  ;;  %1081 = vst [vmem:[#allocation18 + $0x20] sm:$0xff] %v3079_v13  ;;  %v1165_v1 = vmul.f32 %v3079_v13, %v2820_v46 }
 0x895   :  { %2296 = vpow2.f32 %v1590_v14 }
 0x89f   :  { %v2297_v16 = vpop.eup %2296 }
 0x8a0   :  { %v1032_v17 = vadd.f32 1.0, %v2297_v16 }
 0x8a2   :  { %2298 = vrcp.f32 %v1032_v17 }
 0x8ac   :  { %v2299_v19 = vpop.eup %2298 }
 0x8ad   :  { %1079 = vst [vmem:[#allocation16 + $0x20] sm:$0xff] %v2299_v19  ;;  %v1035_v20 = vpack.c.bf16 %v2299_v19, %v2299_v19 }
 0x8af   :  { %2111 = vmatmul.mubr.bf16.vlgmr.msra.gmra.mrb[28].mxu0 %v1035_v20  ;;  %1117 = vmatprep.mubr.bf16.mxu1 %v1035_v20 }
 0x8b0   :  { %2115 = vmatpush3.bf16.msra.mxu0 %v3083_v29  ;;  %1118 = vmatmul.mubr.bf16.vlgmr.msra.gmra.mrb[28].mxu1 %v1083_v28 }
 0x8b1   :  { %2116 = vmatprep.subr.bf16.mxu0 %v2539_v0  ;;  %2130 = vmatprep.mubr.msk.bf16.mxu0 %vm2540_vm0, %v2539_v0 }
 0x8b2   :  { %2135 = vmatpush3.bf16.msra.mxu1 %v2780_v30  ;;  %2150 = vmatprep.mubr.msk.bf16.mxu1 %vm2540_vm0, %v2539_v0 }
 0x8b3   :  { %2136 = vmatprep.subr.bf16.mxu1 %v2539_v0 }
 0x8b4   :  { %2117 = vmatpush3.bf16.msra.mxu0 %v3093_v38 }
 0x8b5   :  { %2118 = vmatprep.subr.bf16.mxu0 %v2539_v0 }
 0x8b6   :  { %2137 = vmatpush3.bf16.msra.mxu1 %v2784_v31 }
 0x8b7   :  { %2138 = vmatprep.subr.bf16.mxu1 %v2539_v0 }
 0x8b8   :  { %2119 = vmatpush3.bf16.msra.mxu0 %v3099_v39 }
 0x8b9   :  { %2120 = vmatprep.subr.bf16.mxu0 %v2539_v0 }
 0x8ba   :  { %2139 = vmatpush3.bf16.msra.mxu1 %v2788_v32 }
 0x8bb   :  { %2140 = vmatprep.subr.bf16.mxu1 %v2539_v0 }
 0x8bc   :  { %2121 = vmatpush3.bf16.msra.mxu0 %v3105_v41 }
 0x8bd   :  { %2122 = vmatprep.subr.bf16.mxu0 %v2539_v0 }
 0x8be   :  { %2141 = vmatpush3.bf16.msra.mxu1 %v2792_v33 }
 0x8bf   :  { %2142 = vmatprep.subr.bf16.mxu1 %v2539_v0 }
 0x8c0   :  { %2123 = vmatpush3.bf16.msra.mxu0 %v2720_v15  ;;  %v3124_v15 = vld [vmem:[#allocation12 + $0x40] sm:$0xff]  }
 0x8c1   :  { %2124 = vmatprep.subr.bf16.mxu0 %v2539_v0 }
 0x8c2   :  { %2143 = vmatpush3.bf16.msra.mxu1 %v2796_v34 }
 0x8c3   :  { %2144 = vmatprep.subr.bf16.mxu1 %v2539_v0 }
 0x8c4   :  { %2125 = vmatpush3.bf16.msra.mxu0 %v2730_v18 }
 0x8c5   :  { %2126 = vmatprep.subr.bf16.mxu0 %v2539_v0 }
 0x8c6   :  { %2145 = vmatpush3.bf16.msra.mxu1 %v2800_v35 }
 0x8c7   :  { %2146 = vmatprep.subr.bf16.mxu1 %v2539_v0 }
 0x8c8   :  { %2127 = vmatpush3.bf16.msra.mxu0 %v2742_v22 }
 0x8c9   :  { %2128 = vmatprep.subr.bf16.mxu0 %v2539_v0 }
 0x8ca   :  { %2147 = vmatpush3.bf16.msra.mxu1 %v2804_v36 }
 0x8cb   :  { %2148 = vmatprep.subr.bf16.mxu1 %v2539_v0 }
 0x8cc   :  { %2129 = vmatpush3.bf16.msra.mxu0 %v2749_v26 }
 0x8cd   :  { %1834 = vmatprep.subr.bf16.mxu0 %v3124_v15 }
 0x8ce   :  { %2149 = vmatpush3.bf16.msra.mxu1 %v2808_v37 }
 0x8cf   :  { %2154 = vmatprep.subr.bf16.mxu1 %v2539_v0 }
 0x982   :  { %v1070_v18 = vpop.f32.mrb[28].mxu0 }
 0x983   :  { %v1071_v42 = vadd.f32 %v2873_v62, %v1070_v18  ;;  %v2112_v22 = vpop.f32.mrb[29].mxu0  ;;  %v1810_v43 = vpop.f32.mrb[28].mxu1  ;;  %v3242_v18 = vld [vmem:[%s3337_s6] ss:$0 sm:$0xff]  ;;  %s2541_s6 = smov [#allocation16]  }
 0x984   :  { %v1073_v44 = vpop.f32.mrb[30].mxu0  ;;  %v1811_v45 = vpop.f32.mrb[29].mxu1  ;;  %s1519_s1 = sshll.u32 %s2541_s6, 4  ;;  %s1520_s1 = int_to_ptr.vmem [resolvable:$true] %s1519_s1 }
 0x985   :  { %1077 = vst [vmem:[#allocation15 + $0x20] sm:$0xff] %v1071_v42  ;;  %v1084_v47 = vpack.c.bf16 %v1071_v42, %v1071_v42  ;;  %v2113_v48 = vpop.f32.mrb[31].mxu0  ;;  %v1812_v49 = vadd.f32 %v1811_v45, %v1810_v43  ;;  %v1813_v26 = vpop.f32.mrb[30].mxu1  ;;  %s2456_s13 = scalar_lea.vmem %s1520_s1, 1024  ;;  %p2461_p13 = scmp.lt.s32.totalorder %s1520_s1, %s1520_s1 }
 0x986   :  { %v1814_v50 = vpop.f32.mrb[31].mxu1  ;;  %p2457_p12 = scmp.ne.s32.totalorder %s1520_s1, %s2456_s13  ;;  %p2462_p0 = scmp.lt.s32.totalorder %s2456_s13, %s2456_s13 }
 0x987   :  { %2131 = vmatmul.mubr.bf16.vlgmr.msra.gmra.mrb[32].mxu0 %v1084_v47  ;;  %v1120_v55 = vadd.f32 %v1812_v49, %v2818_v40 }
 0x988   :  { %1835 = vmatpush3.bf16.msra.mxu0 %v3130_v52  ;;  %p2463_p1 = por %p2462_p0, %p2461_p13 }
 0x989   :  { %1836 = vmatprep.subr.bf16.mxu0 %v3133_v56 }
 0x98a   :  { %p2464_p2 = pnand %p2463_p1, %p2457_p12 }
 0x98c   :  { %1837 = vmatpush3.bf16.msra.mxu0 %v3136_v57 }
 0x98d   :  { %1838 = vmatprep.subr.bf16.mxu0 %v3139_v58 }
 0x990   :  { %1839 = vmatpush3.bf16.msra.mxu0 %v3142_v59 }
 0x991   :  { %1840 = vmatprep.subr.bf16.mxu0 %v3145_v60 }
 0x994   :  { %1841 = vmatpush3.bf16.msra.mxu0 %v3148_v61 }
 0x995   :  { %1842 = vmatprep.subr.bf16.mxu0 %v3151_v3 }
 0x998   :  { %1843 = vmatpush3.bf16.msra.mxu0 %v3154_v6 }
 0x999   :  { %1844 = vmatprep.subr.bf16.mxu0 %v3157_v9 }
 0x99c   :  { %1845 = vmatpush3.bf16.msra.mxu0 %v3160_v12 }
 0x99d   :  { %1846 = vmatprep.subr.bf16.mxu0 %v3163_v53 }
 0x9a0   :  { %1847 = vmatpush3.bf16.msra.mxu0 %v3166_v54 }
 0x9a1   :  { %1848 = vmatprep.subr.bf16.mxu0 %v2744_v23 }
 0x9a4   :  { %1849 = vmatpush3.bf16.msra.mxu0 %v2747_v25 }
 0x9a5   :  { %2174 = vmatprep.subr.bf16.mxu0 %v2539_v0 }
 0xa5a   :  { %v1159_v63 = vpop.f32.mrb[32].mxu0 }
 0xa5b   :  { %v1160_v21 = vadd.f32 %v1159_v63, %v1120_v55  ;;  %v2132_v24 = vpop.f32.mrb[33].mxu0 }
 0xa5c   :  { %v1162_v27 = vpop.f32.mrb[34].mxu0 }
 0xa5d   :  { %v1166_v2 = vmul.f32 %v1160_v21, %v2826_v51  ;;  %v2133_v4 = vpop.f32.mrb[35].mxu0 }
 0xa5f   :  { %v3176_v5 = vadd.f32 %v1166_v2, %v1165_v1 }
 0xa61   :  { %v1591_v23 = vmul.f32 -1.442695, %v3176_v5  ;;  %1220 = vst [vmem:[#allocation18 + $0x28] sm:$0xff] %v3176_v5  ;;  %v1304_v47 = vmul.f32 %v3176_v5, %v2820_v46 }
 0xa63   :  { %2300 = vpow2.f32 %v1591_v23 }
 0xa6d   :  { %v2301_v25 = vpop.eup %2300 }
 0xa6e   :  { %v1171_v7 = vadd.f32 1.0, %v2301_v25 }
 0xa70   :  { %2302 = vrcp.f32 %v1171_v7 }
 0xa7a   :  { %v2303_v40 = vpop.eup %2302 }
 0xa7b   :  { %1218 = vst [vmem:[#allocation16 + $0x28] sm:$0xff] %v2303_v40  ;;  %v1174_v8 = vpack.c.bf16 %v2303_v40, %v2303_v40 }
 0xa7d   :  { %2151 = vmatmul.mubr.bf16.vlgmr.msra.gmra.mrb[32].mxu1 %v1174_v8  ;;  %1256 = vmatprep.mubr.bf16.mxu0 %v1174_v8 }
 0xa7e   :  { %2155 = vmatpush3.bf16.msra.mxu1 %v3083_v29  ;;  %1257 = vmatmul.mubr.bf16.vlgmr.msra.gmra.mrb[36].mxu0 %v1222_v10 }
 0xa7f   :  { %2156 = vmatprep.subr.bf16.mxu1 %v2539_v0  ;;  %2170 = vmatprep.mubr.msk.bf16.mxu1 %vm2540_vm0, %v2539_v0 }
 0xa80   :  { %2175 = vmatpush3.bf16.msra.mxu0 %v2780_v30  ;;  %2190 = vmatprep.mubr.msk.bf16.mxu0 %vm2540_vm0, %v2539_v0  ;;  %v3200_v30 = vld [vmem:[#allocation12 + $0xa0] sm:$0xff]  }
 0xa81   :  { %2176 = vmatprep.subr.bf16.mxu0 %v2539_v0 }
 0xa82   :  { %2157 = vmatpush3.bf16.msra.mxu1 %v3093_v38 }
 0xa83   :  { %2158 = vmatprep.subr.bf16.mxu1 %v2539_v0 }
 0xa84   :  { %2177 = vmatpush3.bf16.msra.mxu0 %v2784_v31  ;;  %v3206_v31 = vld [vmem:[#allocation12 + $0xa8] sm:$0xff]  }
 0xa85   :  { %2178 = vmatprep.subr.bf16.mxu0 %v2539_v0 }
 0xa86   :  { %2159 = vmatpush3.bf16.msra.mxu1 %v3099_v39 }
 0xa87   :  { %2160 = vmatprep.subr.bf16.mxu1 %v2539_v0 }
 0xa88   :  { %2179 = vmatpush3.bf16.msra.mxu0 %v2788_v32  ;;  %v3212_v32 = vld [vmem:[#allocation12 + $0xb0] sm:$0xff]  }
 0xa89   :  { %2180 = vmatprep.subr.bf16.mxu0 %v2539_v0 }
 0xa8a   :  { %2161 = vmatpush3.bf16.msra.mxu1 %v3105_v41 }
 0xa8b   :  { %2162 = vmatprep.subr.bf16.mxu1 %v2539_v0 }
 0xa8c   :  { %2181 = vmatpush3.bf16.msra.mxu0 %v2792_v33  ;;  %v3218_v33 = vld [vmem:[#allocation12 + $0xb8] sm:$0xff]  }
 0xa8d   :  { %2182 = vmatprep.subr.bf16.mxu0 %v2539_v0 }
 0xa8e   :  { %2163 = vmatpush3.bf16.msra.mxu1 %v3200_v30 }
 0xa8f   :  { %2164 = vmatprep.subr.bf16.mxu1 %v2539_v0 }
 0xa90   :  { %2183 = vmatpush3.bf16.msra.mxu0 %v2796_v34 }
 0xa91   :  { %2184 = vmatprep.subr.bf16.mxu0 %v2539_v0 }
 0xa92   :  { %2165 = vmatpush3.bf16.msra.mxu1 %v3206_v31 }
 0xa93   :  { %2166 = vmatprep.subr.bf16.mxu1 %v2539_v0 }
 0xa94   :  { %2185 = vmatpush3.bf16.msra.mxu0 %v2800_v35 }
 0xa95   :  { %2186 = vmatprep.subr.bf16.mxu0 %v2539_v0 }
 0xa96   :  { %2167 = vmatpush3.bf16.msra.mxu1 %v3212_v32 }
 0xa97   :  { %2168 = vmatprep.subr.bf16.mxu1 %v2539_v0 }
 0xa98   :  { %2187 = vmatpush3.bf16.msra.mxu0 %v2804_v36 }
 0xa99   :  { %2188 = vmatprep.subr.bf16.mxu0 %v2539_v0 }
 0xa9a   :  { %2169 = vmatpush3.bf16.msra.mxu1 %v3218_v33 }
 0xa9b   :  { %1874 = vmatprep.subr.bf16.mxu1 %v3124_v15  ;;  %v2335_v15 = vld [vmem:[#allocation12 + $0x38] sm:$0xff]  }
 0xa9c   :  { %2189 = vmatpush3.bf16.msra.mxu0 %v2808_v37  ;;  %v2334_v37 = vld [vmem:[#allocation12 + $0x78] sm:$0xff]  }
 0xa9d   :  { %2194 = vmatprep.subr.bf16.mxu0 %v2539_v0 }
 0xb50   :  { %v1209_v34 = vpop.f32.mrb[32].mxu1 }
 0xb51   :  { %v1210_v35 = vadd.f32 %v2873_v62, %v1209_v34  ;;  %v2152_v11 = vpop.f32.mrb[33].mxu1  ;;  %v1850_v13 = vpop.f32.mrb[36].mxu0 }
 0xb52   :  { %v1212_v14 = vpop.f32.mrb[34].mxu1  ;;  %v1851_v16 = vpop.f32.mrb[37].mxu0 }
 0xb53   :  { %1216 = vst [vmem:[#allocation15 + $0x28] sm:$0xff] %v1210_v35  ;;  %v1223_v36 = vpack.c.bf16 %v1210_v35, %v1210_v35  ;;  %v2153_v17 = vpop.f32.mrb[35].mxu1  ;;  %v1852_v19 = vadd.f32 %v1851_v16, %v1850_v13  ;;  %v1853_v20 = vpop.f32.mrb[38].mxu0 }
 0xb54   :  { %v1854_v28 = vpop.f32.mrb[39].mxu0 }
 0xb55   :  { %2171 = vmatmul.mubr.bf16.vlgmr.msra.gmra.mrb[36].mxu1 %v1223_v36  ;;  %v1259_v42 = vadd.f32 %v3242_v18, %v1852_v19 }
 0xb56   :  { %1875 = vmatpush3.bf16.msra.mxu1 %v3130_v52 }
 0xb57   :  { %1876 = vmatprep.subr.bf16.mxu1 %v3133_v56 }
 0xb5a   :  { %1877 = vmatpush3.bf16.msra.mxu1 %v3136_v57 }
 0xb5b   :  { %1878 = vmatprep.subr.bf16.mxu1 %v3139_v58 }
 0xb5e   :  { %1879 = vmatpush3.bf16.msra.mxu1 %v3142_v59  ;;  %v1361_v59 = vld [vmem:[#allocation6 + $0x1c] sm:$0xf] }
 0xb5f   :  { %1880 = vmatprep.subr.bf16.mxu1 %v3145_v60  ;;  %v2337_v60 = vld [vmem:[#allocation14] sm:$0xff]  }
 0xb62   :  { %1881 = vmatpush3.bf16.msra.mxu1 %v3148_v61  ;;  %v2338_v61 = vld [vmem:[#allocation14 + $0x8] sm:$0xff]  }
 0xb63   :  { %1882 = vmatprep.subr.bf16.mxu1 %v3151_v3  ;;  %v2340_v3 = vld [vmem:[#allocation14 + $0x18] sm:$0xff]  }
 0xb66   :  { %1883 = vmatpush3.bf16.msra.mxu1 %v3154_v6  ;;  %v2344_v6 = vld [vmem:[#allocation14 + $0x38] sm:$0xff]  }
 0xb67   :  { %1884 = vmatprep.subr.bf16.mxu1 %v3157_v9 }
 0xb6a   :  { %1885 = vmatpush3.bf16.msra.mxu1 %v3160_v12 }
 0xb6b   :  { %1886 = vmatprep.subr.bf16.mxu1 %v3163_v53 }
 0xb6e   :  { %1887 = vmatpush3.bf16.msra.mxu1 %v3166_v54 }
 0xb6f   :  { %1888 = vmatprep.subr.bf16.mxu1 %v2334_v37 }
 0xb72   :  { %1889 = vmatpush3.bf16.msra.mxu1 %v2335_v15 }
 0xb73   :  { %2214 = vmatprep.subr.bf16.mxu1 %v2539_v0 }
 0xc28   :  { %v1298_v22 = vpop.f32.mrb[36].mxu1 }
 0xc29   :  { %v1299_v43 = vadd.f32 %v1298_v22, %v1259_v42  ;;  %v2172_v44 = vpop.f32.mrb[37].mxu1 }
 0xc2a   :  { %v1301_v45 = vpop.f32.mrb[38].mxu1 }
 0xc2b   :  { %v1305_v48 = vmul.f32 %v1299_v43, %v2826_v51  ;;  %v2173_v49 = vpop.f32.mrb[39].mxu1 }
 0xc2d   :  { %v3248_v26 = vadd.f32 %v1305_v48, %v1304_v47 }
 0xc2f   :  { %v1592_v50 = vmul.f32 -1.442695, %v3248_v26  ;;  %1359 = vst [vmem:[#allocation18 + $0x30] sm:$0xff] %v3248_v26 }
 0xc31   :  { %2304 = vpow2.f32 %v1592_v50 }
 0xc3b   :  { %v2305_v52 = vpop.eup %2304 }
 0xc3c   :  { %v1310_v56 = vadd.f32 1.0, %v2305_v52 }
 0xc3e   :  { %2306 = vrcp.f32 %v1310_v56 }
 0xc48   :  { %v2307_v57 = vpop.eup %2306 }
 0xc49   :  { %1357 = vst [vmem:[#allocation16 + $0x30] sm:$0xff] %v2307_v57  ;;  %v1313_v58 = vpack.c.bf16 %v2307_v57, %v2307_v57 }
 0xc4b   :  { %2191 = vmatmul.mubr.bf16.vlgmr.msra.gmra.mrb[40].mxu0 %v1313_v58  ;;  %1395 = vmatprep.mubr.bf16.mxu1 %v1313_v58 }
 0xc4c   :  { %2195 = vmatpush3.bf16.msra.mxu0 %v3083_v29  ;;  %1396 = vmatmul.mubr.bf16.vlgmr.msra.gmra.mrb[40].mxu1 %v1361_v59  ;;  %v2339_v29 = vld [vmem:[#allocation14 + $0x10] sm:$0xff]  }
 0xc4d   :  { %2196 = vmatprep.subr.bf16.mxu0 %v2539_v0  ;;  %2210 = vmatprep.mubr.msk.bf16.mxu0 %vm2540_vm0, %v2539_v0 }
 0xc4e   :  { %2215 = vmatpush3.bf16.msra.mxu1 %v2337_v60  ;;  %2230 = vmatprep.mubr.msk.bf16.mxu1 %vm2540_vm0, %v2539_v0 }
 0xc4f   :  { %2216 = vmatprep.subr.bf16.mxu1 %v2539_v0 }
 0xc50   :  { %2197 = vmatpush3.bf16.msra.mxu0 %v3093_v38  ;;  %v2341_v38 = vld [vmem:[#allocation14 + $0x20] sm:$0xff]  }
 0xc51   :  { %2198 = vmatprep.subr.bf16.mxu0 %v2539_v0 }
 0xc52   :  { %2217 = vmatpush3.bf16.msra.mxu1 %v2338_v61 }
 0xc53   :  { %2218 = vmatprep.subr.bf16.mxu1 %v2539_v0 }
 0xc54   :  { %2199 = vmatpush3.bf16.msra.mxu0 %v3099_v39  ;;  %v2342_v39 = vld [vmem:[#allocation14 + $0x28] sm:$0xff]  }
 0xc55   :  { %2200 = vmatprep.subr.bf16.mxu0 %v2539_v0 }
 0xc56   :  { %2219 = vmatpush3.bf16.msra.mxu1 %v2339_v29 }
 0xc57   :  { %2220 = vmatprep.subr.bf16.mxu1 %v2539_v0 }
 0xc58   :  { %2201 = vmatpush3.bf16.msra.mxu0 %v3105_v41  ;;  %v2343_v41 = vld [vmem:[#allocation14 + $0x30] sm:$0xff]  }
 0xc59   :  { %2202 = vmatprep.subr.bf16.mxu0 %v2539_v0 }
 0xc5a   :  { %2221 = vmatpush3.bf16.msra.mxu1 %v2340_v3 }
 0xc5b   :  { %2222 = vmatprep.subr.bf16.mxu1 %v2539_v0 }
 0xc5c   :  { %2203 = vmatpush3.bf16.msra.mxu0 %v3200_v30 }
 0xc5d   :  { %2204 = vmatprep.subr.bf16.mxu0 %v2539_v0 }
 0xc5e   :  { %2223 = vmatpush3.bf16.msra.mxu1 %v2341_v38 }
 0xc5f   :  { %2224 = vmatprep.subr.bf16.mxu1 %v2539_v0 }
 0xc60   :  { %2205 = vmatpush3.bf16.msra.mxu0 %v3206_v31 }
 0xc61   :  { %2206 = vmatprep.subr.bf16.mxu0 %v2539_v0 }
 0xc62   :  { %2225 = vmatpush3.bf16.msra.mxu1 %v2342_v39 }
 0xc63   :  { %2226 = vmatprep.subr.bf16.mxu1 %v2539_v0 }
 0xc64   :  { %2207 = vmatpush3.bf16.msra.mxu0 %v3212_v32 }
 0xc65   :  { %2208 = vmatprep.subr.bf16.mxu0 %v2539_v0 }
 0xc66   :  { %2227 = vmatpush3.bf16.msra.mxu1 %v2343_v41 }
 0xc67   :  { %2228 = vmatprep.subr.bf16.mxu1 %v2539_v0 }
 0xc68   :  { %2209 = vmatpush3.bf16.msra.mxu0 %v3218_v33 }
 0xc6a   :  { %2229 = vmatpush3.bf16.msra.mxu1 %v2344_v6 }
 0xd1e   :  { %v1348_v9 = vpop.f32.mrb[40].mxu0 }
 0xd1f   :  { %v1349_v12 = vadd.f32 %v2873_v62, %v1348_v9  ;;  %v2192_v53 = vpop.f32.mrb[41].mxu0  ;;  %v1890_v54 = vpop.f32.mrb[40].mxu1  ;;  %v1443_v62 = vmul.f32 %v3248_v26, %v2820_v46 }
 0xd20   :  { %v1351_v55 = vpop.f32.mrb[42].mxu0  ;;  %v1891_v63 = vpop.f32.mrb[41].mxu1 }
 0xd21   :  { %1355 = vst [vmem:[#allocation15 + $0x30] sm:$0xff] %v1349_v12  ;;  %v1362_v21 = vpack.c.bf16 %v1349_v12, %v1349_v12  ;;  %v2193_v24 = vpop.f32.mrb[43].mxu0  ;;  %v1892_v27 = vadd.f32 %v1891_v63, %v1890_v54  ;;  %v1893_v1 = vpop.f32.mrb[42].mxu1 }
 0xd22   :  { %v1894_v2 = vpop.f32.mrb[43].mxu1 }
 0xd23   :  { %2211 = vmatmul.mubr.bf16.vlgmr.msra.gmra.mrb[44].mxu0 %v1362_v21  ;;  %v1398_v0 = vadd.f32 %v3242_v18, %v1892_v27 }
 0xdf6   :  { %v1437_v4 = vpop.f32.mrb[44].mxu0 }
 0xdf7   :  { %v1438_v5 = vadd.f32 %v1437_v4, %v1398_v0  ;;  %v2212_v23 = vpop.f32.mrb[45].mxu0 }
 0xdf8   :  { %v1440_v25 = vpop.f32.mrb[46].mxu0 }
 0xdf9   :  { %v1444_v7 = vmul.f32 %v1438_v5, %v2826_v51  ;;  %v2213_v40 = vpop.f32.mrb[47].mxu0 }
 0xdfb   :  { %v1445_v8 = vadd.f32 %v1444_v7, %v1443_v62 }
 0xdfd   :  { %v1593_v10 = vmul.f32 -1.442695, %v1445_v8  ;;  %1498 = vst [vmem:[#allocation18 + $0x38] sm:$0xff] %v1445_v8 }
 0xdff   :  { %2308 = vpow2.f32 %v1593_v10 }
 0xe09   :  { %v2309_v30 = vpop.eup %2308 }
 0xe0a   :  { %v1449_v31 = vadd.f32 1.0, %v2309_v30 }
 0xe0c   :  { %2310 = vrcp.f32 %v1449_v31 }
 0xe16   :  { %v2311_v32 = vpop.eup %2310 }
 0xe17   :  { %1496 = vst [vmem:[#allocation16 + $0x38] sm:$0xff] %v2311_v32  ;;  %v1452_v33 = vpack.c.bf16 %v2311_v32, %v2311_v32 }
 0xe19   :  { %2231 = vmatmul.mubr.bf16.vlgmr.msra.gmra.mrb[44].mxu1 %v1452_v33 }
 0xe1a   :  { %2467 = shalt.err (!%p2464_p2)
}
 0xe1b   :  { %s2468_s12 = scalar_lea.hbm %s3341_s10, 1024 }
 0xe1c   :  { %p2469_p3 = scmp.ne.s32.totalorder %s3341_s10, %s2468_s12  ;;  %p2472_p4 = scmp.lt.u32.totalorder %s2468_s12, %s3341_s10 }
 0xe1e   :  { %p2474_p5 = pnand %p2472_p4, %p2469_p3 }
 0xe20   :  { %2477 = shalt.err (!%p2474_p5)
}
 0xe21   :  { %s2542_s16 = smov 128   ;;  %s2543_s19 = smov 8  }
 0xe22   :  { %1525 = dma.vmem_to_hbm [thread:$0]  %s1520_s1, 1024, %s3341_s10, [#allocation17], %s2542_s16, %s2542_s16, %s2543_s19  }
 0xe23   :  { %s2544_s7 = smov [#allocation18]  }
 0xe24   :  { %s1531_s18 = sshll.u32 %s2544_s7, 4  ;;  %s1532_s18 = int_to_ptr.vmem [resolvable:$true] %s1531_s18 }
 0xe25   :  { %s2478_s3 = scalar_lea.vmem %s1532_s18, 1024  ;;  %p2483_p7 = scmp.lt.s32.totalorder %s1532_s18, %s1532_s18 }
 0xe26   :  { %p2479_p6 = scmp.ne.s32.totalorder %s1532_s18, %s2478_s3  ;;  %p2484_p8 = scmp.lt.s32.totalorder %s2478_s3, %s2478_s3 }
 0xe28   :  { %p2485_p9 = por %p2484_p8, %p2483_p7 }
 0xe2a   :  { %p2486_p10 = pnand %p2485_p9, %p2479_p6 }
 0xe2c   :  { %2489 = shalt.err (!%p2486_p10)
}
 0xe2d   :  { %s2490_s21 = scalar_lea.hbm %s3342_s11, 1024 }
 0xe2e   :  { %p2491_p11 = scmp.ne.s32.totalorder %s3342_s11, %s2490_s21  ;;  %p2494_p12 = scmp.lt.u32.totalorder %s2490_s21, %s3342_s11 }
 0xe30   :  { %p2496_p13 = pnand %p2494_p12, %p2491_p11 }
 0xe32   :  { %2499 = shalt.err (!%p2496_p13)
}
 0xe33   :  { %1537 = dma.vmem_to_hbm [thread:$0]  %s1532_s18, 1024, %s3342_s11, [#allocation17], %s2542_s16, %s2542_s16, %s2543_s19  }
 0xe34   :  { %s2545_s26 = smov [#allocation15]   ;;  %v2345_v51 = vld [vmem:[%s3339_s8] ss:$0 sm:$0xff] }
 0xe35   :  { %s1507_s27 = sshll.u32 %s2545_s26, 4  ;;  %s1508_s27 = int_to_ptr.vmem [resolvable:$true] %s1507_s27 }
 0xe36   :  { %s2500_s13 = scalar_lea.vmem %s1508_s27, 1024  ;;  %p2505_p1 = scmp.lt.s32.totalorder %s1508_s27, %s1508_s27 }
 0xe37   :  { %p2501_p0 = scmp.ne.s32.totalorder %s1508_s27, %s2500_s13  ;;  %p2506_p2 = scmp.lt.s32.totalorder %s2500_s13, %s2500_s13 }
 0xe39   :  { %p2507_p3 = por %p2506_p2, %p2505_p1 }
 0xe3b   :  { %p2508_p4 = pnand %p2507_p3, %p2501_p0 }
 0xeec   :  { %v1487_v46 = vpop.f32.mrb[44].mxu1 }
 0xeed   :  { %v1488_v34 = vadd.f32 %v2345_v51, %v1487_v46  ;;  %v2232_v35 = vpop.f32.mrb[45].mxu1 }
 0xeee   :  { %v1490_v11 = vpop.f32.mrb[46].mxu1 }
 0xeef   :  { %1494 = vst [vmem:[#allocation15 + $0x38] sm:$0xff] %v1488_v34  ;;  %v2233_v13 = vpop.f32.mrb[47].mxu1 }
 0xef0   :  { %2511 = shalt.err (!%p2508_p4)
}
 0xef1   :  { %s2512_s29 = scalar_lea.hbm %s3340_s9, 1024 }
 0xef2   :  { %p2513_p5 = scmp.ne.s32.totalorder %s3340_s9, %s2512_s29  ;;  %p2516_p6 = scmp.lt.u32.totalorder %s2512_s29, %s3340_s9 }
 0xef4   :  { %p2518_p7 = pnand %p2516_p6, %p2513_p5 }
 0xef6   :  { %2521 = shalt.err (!%p2518_p7)
}
 0xef7   :  { %1513 = dma.vmem_to_hbm [thread:$0]  %s1508_s27, 1024, %s3340_s9, [#allocation8], %s2542_s16, %s2542_s16, %s2543_s19  }
 0xef8   :  { %2528 = dma.done.wait [#allocation8], 1024  }
 0xef9   :  { %2529 = vsyncadd [#allocation8], 4294966272 }
 0xefa   :  { %2530 = dma.done.wait [#allocation17], 2048  }
 0xefb   :  { %2531 = vsyncadd [#allocation17], 4294965248 }
 0xefc   :  { %1547 = vsyncpa [#allocation7], 1 }
 0xefd   :  { %1548 = vsyncpa [#allocation10], 1 }
 0xefe   :  { %1549 = vsyncpa [#allocation13], 1 }
 0xeff   :  { %1550 = vsyncpa [#allocation8], 1 }
 0xf00   :  { %1551 = vsyncpa [#allocation17], 1 }

</bundles_post_ra>
